<compile_context>
chip_gen: v7x
topology: tpu7x:2x2x1
jax: 0.10.0
libtpu: 0.0.40
codegen_flags: <defaults>
</compile_context>

<pallas_src>
import functools

import jax
import jax.numpy as jnp
from jax.experimental import pallas as pl
from jax.experimental.pallas import tpu as pltpu

LANE = 128       # lane-dense output width (real output is column 0)
TB_MAX = 256     # max batch tile; sweep up to 512 for large-batch v5e/v6e


def _round_up(n, m):
    return ((n + m - 1) // m) * m


def _mlp_kernel(x_ref,
                w1_ref, b1_ref,
                w2_ref, b2_ref,
                w3_ref, b3_ref,
                w4_ref, b4_ref,
                w5_ref, b5_ref,
                o_ref, *, bf16_epilogue):
    # Input arrives f32; cast to bf16 on the VPU (hidden under the MXU work).
    h = x_ref[...].astype(jnp.bfloat16)

    def layer(h, w_ref, b_ref):
        # MXU matmul with f32 accumulation.
        z = jnp.dot(h, w_ref[...], preferred_element_type=jnp.float32)
        if bf16_epilogue:
            # v6e/v7x: bf16 bias + ReLU halves vreg/VMEM traffic on intermediates.
            z = z.astype(jnp.bfloat16) + b_ref[...].astype(jnp.bfloat16)
            return jnp.maximum(z, 0)
        # v5e (no bf16 VALU): keep the element-wise epilogue in f32.
        z = z + b_ref[...]
        return jnp.maximum(z, 0.0).astype(jnp.bfloat16)

    h = layer(h, w1_ref, b1_ref)
    h = layer(h, w2_ref, b2_ref)
    h = layer(h, w3_ref, b3_ref)
    h = layer(h, w4_ref, b4_ref)

    # Final layer + sigmoid (f32 math; divide goes to the EUP via approx recip).
    z = jnp.dot(h, w5_ref[...], preferred_element_type=jnp.float32) + b5_ref[...]
    s = pl.reciprocal(1.0 + jnp.exp(-z), approx=True)
    s = jnp.clip(s, 0.0, 1.0)          # approx recip can overshoot 1 by ~2^-12
    o_ref[...] = s.astype(o_ref.dtype)


def prepare_params(params):
    """ONE-TIME weight prep (hoisted out of the forward pass).

    Pads layer-4/5 output dims to LANE columns (exact same math: ReLU(0+0)=0,
    padded rows of W5 are zero) and casts weights to bf16 (halves weight DMA).
    Biases stay f32 (cast in-kernel when the bf16 epilogue is used).
    """
    (w1, b1), (w2, b2), (w3, b3), (w4, b4), (w5, b5) = params
    w4 = jnp.pad(w4, ((0, 0), (0, LANE - w4.shape[1])))
    b4 = jnp.pad(b4, ((0, 0), (0, LANE - b4.shape[1])))
    w5 = jnp.pad(w5, ((0, LANE - w5.shape[0]), (0, LANE - w5.shape[1])))
    b5 = jnp.pad(b5, ((0, 0), (0, LANE - b5.shape[1])))
    weights = tuple(w.astype(jnp.bfloat16) for w in (w1, w2, w3, w4, w5))
    biases = tuple(b.astype(jnp.float32) for b in (b1, b2, b3, b4, b5))
    return weights, biases


@functools.partial(jax.jit, static_argnames=("tb_max", "bf16_epilogue"))
def discriminator_forward(x_nchw, weights, biases, *, tb_max=TB_MAX,
                          bf16_epilogue=False):
    """x_nchw: (B, 1, H, W) float32.  weights/biases: output of prepare_params."""
    B = x_nchw.shape[0]
    x_flat = x_nchw.reshape(B, -1).astype(jnp.float32)   # PyTorch x.view(B, -1)
    K = x_flat.shape[1]

    # Batch tile: no more blind padding to 256.  16 = bf16 sublane pack.
    tb = min(tb_max, _round_up(B, 16))
    b_pad = _round_up(B, tb)
    if b_pad == tb and tb >= 256:
        tb //= 2                      # >=2 grid steps so v7x's 2nd TC gets work
    if b_pad != B:
        x_flat = jnp.pad(x_flat, ((0, b_pad - B), (0, 0)))

    args = [x_flat]
    in_specs = [pl.BlockSpec((tb, K), lambda i: (i, 0))]   # batch-tiled input (f32)
    for w, b in zip(weights, biases):
        args += [w, b]
        # Constant index_map -> weights/biases DMA'd once, VMEM-resident across
        # all batch tiles.
        in_specs += [pl.BlockSpec(w.shape, lambda i: (0, 0)),
                     pl.BlockSpec(b.shape, lambda i: (0, 0))]

    out = pl.pallas_call(
        functools.partial(_mlp_kernel, bf16_epilogue=bf16_epilogue),
        out_shape=jax.ShapeDtypeStruct((b_pad, LANE), jnp.bfloat16),
        grid=(b_pad // tb,),
        in_specs=in_specs,
        out_specs=pl.BlockSpec((tb, LANE), lambda i: (i, 0)),
        compiler_params=pltpu.CompilerParams(
            dimension_semantics=("parallel",),
            vmem_limit_bytes=32 * 1024 * 1024,
        ),
    )(*args)

    # Real output: first B rows, column 0 (rest are padding); return f32.
    return out[:B, 0:1].astype(jnp.float32)


def init_params(key, in_features):
    """Deterministic init mimicking nn.Linear default U(-1/sqrt(fan_in), ...)."""
    dims = [in_features, 1024, 512, 256, 64, 1]
    params = []
    for i in range(len(dims) - 1):
        fan_in, fan_out = dims[i], dims[i + 1]
        key, kw, kb = jax.random.split(key, 3)
        bound = 1.0 / jnp.sqrt(fan_in)
        # stored as (in, out) == transpose of PyTorch's (out, in) weight
        w = jax.random.uniform(kw, (fan_in, fan_out), jnp.float32, -bound, bound)
        b = jax.random.uniform(kb, (1, fan_out), jnp.float32, -bound, bound)
        params.append((w, b))
    return params


def _reference_forward(x_nchw, weights, biases, *, bf16_epilogue=False):
    """Pure-JAX reference mirroring the kernel's numerics (bf16 MXU operands,
    f32 accumulation, exact sigmoid)."""
    B = x_nchw.shape[0]
    h = x_nchw.reshape(B, -1).astype(jnp.bfloat16)
    n = len(weights)
    for li, (w, b) in enumerate(zip(weights, biases)):
        z = jnp.dot(h, w, preferred_element_type=jnp.float32)
        if li < n - 1:
            if bf16_epilogue:
                h = jnp.maximum(z.astype(jnp.bfloat16) + b.astype(jnp.bfloat16), 0)
            else:
                h = jnp.maximum(z + b, 0.0).astype(jnp.bfloat16)
        else:
            z = z + b
            return jax.nn.sigmoid(z[:, 0:1])


def _use_bf16_epilogue():
    """bf16 VALU exists on v6e/v7x; keep f32 element-wise path on older chips."""
    try:
        kind = jax.devices()[0].device_kind.lower()
    except Exception:
        return False
    return not any(v in kind for v in ("v2", "v3", "v4", "v5"))


if __name__ == "__main__":
    key = jax.random.PRNGKey(0)
    k_x, k_p = jax.random.split(key)

    # Small shapes consistent with the module: image_size = (16, 16), 1 channel.
    B, H, W = 2, 16, 16
    x = jax.random.normal(k_x, (B, 1, H, W), jnp.float32)

    params = init_params(k_p, H * W * 1)
    weights, biases = prepare_params(params)          # one-time prep (hoisted)
    weights = jax.block_until_ready(weights)

    bf16_epi = _use_bf16_epilogue()

    y = discriminator_forward(x, weights, biases, bf16_epilogue=bf16_epi)
    y = jax.block_until_ready(y)

    assert y.shape == (B, 1)

    y_ref = _reference_forward(x, weights, biases, bf16_epilogue=bf16_epi)
    assert jnp.allclose(y, y_ref, atol=1e-2, rtol=0.0), (y, y_ref)

    print("KERNEL_OK")
</pallas_src>

<mosaic_0001>
module attributes {stable_mosaic.version = 11 : i64} {
  func.func @_mlp_kernel(%arg0: i32, %arg1: memref<16x256xf32, #tpu.memory_space<vmem>>, %arg2: memref<256x1024xbf16, #tpu.memory_space<vmem>>, %arg3: memref<1x1024xf32, #tpu.memory_space<vmem>>, %arg4: memref<1024x512xbf16, #tpu.memory_space<vmem>>, %arg5: memref<1x512xf32, #tpu.memory_space<vmem>>, %arg6: memref<512x256xbf16, #tpu.memory_space<vmem>>, %arg7: memref<1x256xf32, #tpu.memory_space<vmem>>, %arg8: memref<256x128xbf16, #tpu.memory_space<vmem>>, %arg9: memref<1x128xf32, #tpu.memory_space<vmem>>, %arg10: memref<128x128xbf16, #tpu.memory_space<vmem>>, %arg11: memref<1x128xf32, #tpu.memory_space<vmem>>, %arg12: memref<16x128xbf16, #tpu.memory_space<vmem>>) attributes {dimension_semantics = [#tpu.dimension_semantics<parallel>], iteration_bounds = array<i64: 1>, scalar_prefetch = 0 : i64, scratch_operands = 0 : i64, tpu.core_type = #tpu.core_type<tc>, window_params = [{transform_indices = @transform_0, window_bounds = array<i64: 16, 256>}, {pipeline_mode = #tpu.pipeline_mode<synchronous>, transform_indices = @transform_1, window_bounds = array<i64: 256, 1024>}, {pipeline_mode = #tpu.pipeline_mode<synchronous>, transform_indices = @transform_2, window_bounds = array<i64: 1, 1024>}, {pipeline_mode = #tpu.pipeline_mode<synchronous>, transform_indices = @transform_3, window_bounds = array<i64: 1024, 512>}, {pipeline_mode = #tpu.pipeline_mode<synchronous>, transform_indices = @transform_4, window_bounds = array<i64: 1, 512>}, {pipeline_mode = #tpu.pipeline_mode<synchronous>, transform_indices = @transform_5, window_bounds = array<i64: 512, 256>}, {pipeline_mode = #tpu.pipeline_mode<synchronous>, transform_indices = @transform_6, window_bounds = array<i64: 1, 256>}, {pipeline_mode = #tpu.pipeline_mode<synchronous>, transform_indices = @transform_7, window_bounds = array<i64: 256, 128>}, {pipeline_mode = #tpu.pipeline_mode<synchronous>, transform_indices = @transform_8, window_bounds = array<i64: 1, 128>}, {pipeline_mode = #tpu.pipeline_mode<synchronous>, transform_indices = @transform_9, window_bounds = array<i64: 128, 128>}, {pipeline_mode = #tpu.pipeline_mode<synchronous>, transform_indices = @transform_10, window_bounds = array<i64: 1, 128>}, {transform_indices = @transform_11, window_bounds = array<i64: 16, 128>}]} {
    %c0 = arith.constant 0 : index
    %c0_0 = arith.constant 0 : index
    %0 = vector.load %arg1[%c0, %c0_0] : memref<16x256xf32, #tpu.memory_space<vmem>>, vector<16x256xf32>
    %1 = arith.truncf %0 : vector<16x256xf32> to vector<16x256xbf16>
    %c0_1 = arith.constant 0 : index
    %c0_2 = arith.constant 0 : index
    %2 = vector.load %arg2[%c0_1, %c0_2] : memref<256x1024xbf16, #tpu.memory_space<vmem>>, vector<256x1024xbf16>
    %cst = arith.constant dense<0.000000e+00> : vector<16x1024xf32>
    %3 = tpu.matmul %1, %2, %cst {dimension_numbers = #tpu.dot_dimension_numbers<[1], [0], [0], [1], [0, 0, 1, 1], [], []>} : vector<16x256xbf16>, vector<256x1024xbf16>, vector<16x1024xf32> -> vector<16x1024xf32>
    %4 = arith.truncf %3 : vector<16x1024xf32> to vector<16x1024xbf16>
    %c0_3 = arith.constant 0 : index
    %c0_4 = arith.constant 0 : index
    %5 = vector.load %arg3[%c0_3, %c0_4] : memref<1x1024xf32, #tpu.memory_space<vmem>>, vector<1x1024xf32>
    %6 = arith.truncf %5 : vector<1x1024xf32> to vector<1x1024xbf16>
    %7 = vector.broadcast %6 : vector<1x1024xbf16> to vector<16x1024xbf16>
    %8 = arith.addf %4, %7 : vector<16x1024xbf16>
    %cst_5 = arith.constant 0.000000e+00 : bf16
    %9 = vector.broadcast %cst_5 : bf16 to vector<16x1024xbf16>
    %10 = arith.maximumf %8, %9 : vector<16x1024xbf16>
    %c0_6 = arith.constant 0 : index
    %c0_7 = arith.constant 0 : index
    %11 = vector.load %arg4[%c0_6, %c0_7] : memref<1024x512xbf16, #tpu.memory_space<vmem>>, vector<1024x512xbf16>
    %cst_8 = arith.constant dense<0.000000e+00> : vector<16x512xf32>
    %12 = tpu.matmul %10, %11, %cst_8 {dimension_numbers = #tpu.dot_dimension_numbers<[1], [0], [0], [1], [0, 0, 1, 1], [], []>} : vector<16x1024xbf16>, vector<1024x512xbf16>, vector<16x512xf32> -> vector<16x512xf32>
    %13 = arith.truncf %12 : vector<16x512xf32> to vector<16x512xbf16>
    %c0_9 = arith.constant 0 : index
    %c0_10 = arith.constant 0 : index
    %14 = vector.load %arg5[%c0_9, %c0_10] : memref<1x512xf32, #tpu.memory_space<vmem>>, vector<1x512xf32>
    %15 = arith.truncf %14 : vector<1x512xf32> to vector<1x512xbf16>
    %16 = vector.broadcast %15 : vector<1x512xbf16> to vector<16x512xbf16>
    %17 = arith.addf %13, %16 : vector<16x512xbf16>
    %cst_11 = arith.constant 0.000000e+00 : bf16
    %18 = vector.broadcast %cst_11 : bf16 to vector<16x512xbf16>
    %19 = arith.maximumf %17, %18 : vector<16x512xbf16>
    %c0_12 = arith.constant 0 : index
    %c0_13 = arith.constant 0 : index
    %20 = vector.load %arg6[%c0_12, %c0_13] : memref<512x256xbf16, #tpu.memory_space<vmem>>, vector<512x256xbf16>
    %cst_14 = arith.constant dense<0.000000e+00> : vector<16x256xf32>
    %21 = tpu.matmul %19, %20, %cst_14 {dimension_numbers = #tpu.dot_dimension_numbers<[1], [0], [0], [1], [0, 0, 1, 1], [], []>} : vector<16x512xbf16>, vector<512x256xbf16>, vector<16x256xf32> -> vector<16x256xf32>
    %22 = arith.truncf %21 : vector<16x256xf32> to vector<16x256xbf16>
    %c0_15 = arith.constant 0 : index
    %c0_16 = arith.constant 0 : index
    %23 = vector.load %arg7[%c0_15, %c0_16] : memref<1x256xf32, #tpu.memory_space<vmem>>, vector<1x256xf32>
    %24 = arith.truncf %23 : vector<1x256xf32> to vector<1x256xbf16>
    %25 = vector.broadcast %24 : vector<1x256xbf16> to vector<16x256xbf16>
    %26 = arith.addf %22, %25 : vector<16x256xbf16>
    %cst_17 = arith.constant 0.000000e+00 : bf16
    %27 = vector.broadcast %cst_17 : bf16 to vector<16x256xbf16>
    %28 = arith.maximumf %26, %27 : vector<16x256xbf16>
    %c0_18 = arith.constant 0 : index
    %c0_19 = arith.constant 0 : index
    %29 = vector.load %arg8[%c0_18, %c0_19] : memref<256x128xbf16, #tpu.memory_space<vmem>>, vector<256x128xbf16>
    %cst_20 = arith.constant dense<0.000000e+00> : vector<16x128xf32>
    %30 = tpu.matmul %28, %29, %cst_20 {dimension_numbers = #tpu.dot_dimension_numbers<[1], [0], [0], [1], [0, 0, 1, 1], [], []>} : vector<16x256xbf16>, vector<256x128xbf16>, vector<16x128xf32> -> vector<16x128xf32>
    %31 = arith.truncf %30 : vector<16x128xf32> to vector<16x128xbf16>
    %c0_21 = arith.constant 0 : index
    %c0_22 = arith.constant 0 : index
    %32 = vector.load %arg9[%c0_21, %c0_22] : memref<1x128xf32, #tpu.memory_space<vmem>>, vector<1x128xf32>
    %33 = arith.truncf %32 : vector<1x128xf32> to vector<1x128xbf16>
    %34 = vector.broadcast %33 : vector<1x128xbf16> to vector<16x128xbf16>
    %35 = arith.addf %31, %34 : vector<16x128xbf16>
    %cst_23 = arith.constant 0.000000e+00 : bf16
    %36 = vector.broadcast %cst_23 : bf16 to vector<16x128xbf16>
    %37 = arith.maximumf %35, %36 : vector<16x128xbf16>
    %c0_24 = arith.constant 0 : index
    %c0_25 = arith.constant 0 : index
    %38 = vector.load %arg10[%c0_24, %c0_25] : memref<128x128xbf16, #tpu.memory_space<vmem>>, vector<128x128xbf16>
    %cst_26 = arith.constant dense<0.000000e+00> : vector<16x128xf32>
    %39 = tpu.matmul %37, %38, %cst_26 {dimension_numbers = #tpu.dot_dimension_numbers<[1], [0], [0], [1], [0, 0, 1, 1], [], []>} : vector<16x128xbf16>, vector<128x128xbf16>, vector<16x128xf32> -> vector<16x128xf32>
    %c0_27 = arith.constant 0 : index
    %c0_28 = arith.constant 0 : index
    %40 = vector.load %arg11[%c0_27, %c0_28] : memref<1x128xf32, #tpu.memory_space<vmem>>, vector<1x128xf32>
    %41 = vector.broadcast %40 : vector<1x128xf32> to vector<16x128xf32>
    %42 = arith.addf %39, %41 : vector<16x128xf32>
    %cst_29 = arith.constant 0.000000e+00 : f32
    %43 = vector.broadcast %cst_29 : f32 to vector<16x128xf32>
    %44 = arith.subf %43, %42 : vector<16x128xf32>
    %45 = math.exp %44 : vector<16x128xf32>
    %cst_30 = arith.constant 1.000000e+00 : f32
    %46 = vector.broadcast %cst_30 : f32 to vector<16x128xf32>
    %47 = arith.addf %46, %45 : vector<16x128xf32>
    %48 = tpu.reciprocal %47 {approx = true} : vector<16x128xf32> -> vector<16x128xf32>
    %cst_31 = arith.constant 0.000000e+00 : f32
    %cst_32 = arith.constant 1.000000e+00 : f32
    %49 = vector.broadcast %cst_31 : f32 to vector<16x128xf32>
    %50 = arith.maximumf %49, %48 : vector<16x128xf32>
    %51 = vector.broadcast %cst_32 : f32 to vector<16x128xf32>
    %52 = arith.minimumf %51, %50 : vector<16x128xf32>
    %53 = arith.truncf %52 : vector<16x128xf32> to vector<16x128xbf16>
    %c0_33 = arith.constant 0 : index
    %c0_34 = arith.constant 0 : index
    %54 = vector.load %arg12[%c0_33, %c0_34] : memref<16x128xbf16, #tpu.memory_space<vmem>>, vector<16x128xbf16>
    tpu.vector_store %arg12[%c0_33, %c0_34], %53 {strides = array<i32>} : memref<16x128xbf16, #tpu.memory_space<vmem>>, vector<16x128xbf16>,
    return
  }
  func.func @transform_0(%arg0: i32) -> (i32, i32) {
    %c0_i32 = arith.constant 0 : i32
    %c0_i32_0 = arith.constant 0 : i32
    return %arg0, %c0_i32 : i32, i32
  }
  func.func @transform_1(%arg0: i32) -> (i32, i32) {
    %c0_i32 = arith.constant 0 : i32
    %c0_i32_0 = arith.constant 0 : i32
    %c0_i32_1 = arith.constant 0 : i32
    return %c0_i32, %c0_i32_0 : i32, i32
  }
  func.func @transform_2(%arg0: i32) -> (i32, i32) {
    %c0_i32 = arith.constant 0 : i32
    %c0_i32_0 = arith.constant 0 : i32
    %c0_i32_1 = arith.constant 0 : i32
    return %c0_i32, %c0_i32_0 : i32, i32
  }
  func.func @transform_3(%arg0: i32) -> (i32, i32) {
    %c0_i32 = arith.constant 0 : i32
    %c0_i32_0 = arith.constant 0 : i32
    %c0_i32_1 = arith.constant 0 : i32
    return %c0_i32, %c0_i32_0 : i32, i32
  }
  func.func @transform_4(%arg0: i32) -> (i32, i32) {
    %c0_i32 = arith.constant 0 : i32
    %c0_i32_0 = arith.constant 0 : i32
    %c0_i32_1 = arith.constant 0 : i32
    return %c0_i32, %c0_i32_0 : i32, i32
  }
  func.func @transform_5(%arg0: i32) -> (i32, i32) {
    %c0_i32 = arith.constant 0 : i32
    %c0_i32_0 = arith.constant 0 : i32
    %c0_i32_1 = arith.constant 0 : i32
    return %c0_i32, %c0_i32_0 : i32, i32
  }
  func.func @transform_6(%arg0: i32) -> (i32, i32) {
    %c0_i32 = arith.constant 0 : i32
    %c0_i32_0 = arith.constant 0 : i32
    %c0_i32_1 = arith.constant 0 : i32
    return %c0_i32, %c0_i32_0 : i32, i32
  }
  func.func @transform_7(%arg0: i32) -> (i32, i32) {
    %c0_i32 = arith.constant 0 : i32
    %c0_i32_0 = arith.constant 0 : i32
    %c0_i32_1 = arith.constant 0 : i32
    return %c0_i32, %c0_i32_0 : i32, i32
  }
  func.func @transform_8(%arg0: i32) -> (i32, i32) {
    %c0_i32 = arith.constant 0 : i32
    %c0_i32_0 = arith.constant 0 : i32
    %c0_i32_1 = arith.constant 0 : i32
    return %c0_i32, %c0_i32_0 : i32, i32
  }
  func.func @transform_9(%arg0: i32) -> (i32, i32) {
    %c0_i32 = arith.constant 0 : i32
    %c0_i32_0 = arith.constant 0 : i32
    %c0_i32_1 = arith.constant 0 : i32
    return %c0_i32, %c0_i32_0 : i32, i32
  }
  func.func @transform_10(%arg0: i32) -> (i32, i32) {
    %c0_i32 = arith.constant 0 : i32
    %c0_i32_0 = arith.constant 0 : i32
    %c0_i32_1 = arith.constant 0 : i32
    return %c0_i32, %c0_i32_0 : i32, i32
  }
  func.func @transform_11(%arg0: i32) -> (i32, i32) {
    %c0_i32 = arith.constant 0 : i32
    %c0_i32_0 = arith.constant 0 : i32
    return %arg0, %c0_i32 : i32, i32
  }
}

</mosaic_0001>

<bundles_post_ra>
// kernel: discriminator_forward.1
= control target key start
LH: loop header
LB: loop body
LE: loop exit
PB: predicated region body
PF: predicated region fallthrough
CT: control target
= control target key end

     0   :  { %16 = vsyncpa [#allocation3], 0  ;;  %s5422_s0 = inlined_call_operand.vmem [shape: f32[16,256], index: 0, kind: input, shape index: {}]   ;;  %s5423_s1 = inlined_call_operand.hbm [shape: bf16[256,1024], index: 1, kind: input, shape index: {}]   ;;  %s5424_s2 = inlined_call_operand.vmem [shape: f32[1,1024], index: 2, kind: input, shape index: {}]   ;;  %s5425_s3 = inlined_call_operand.hbm [shape: bf16[1024,512], index: 3, kind: input, shape index: {}]   ;;  %s5426_s4 = inlined_call_operand.vmem [shape: f32[1,512], index: 4, kind: input, shape index: {}]   ;;  %s5427_s5 = inlined_call_operand.hbm [shape: bf16[512,256], index: 5, kind: input, shape index: {}]   ;;  %s5428_s6 = inlined_call_operand.vmem [shape: f32[1,256], index: 6, kind: input, shape index: {}]   ;;  %s5429_s7 = inlined_call_operand.hbm [shape: bf16[256,128], index: 7, kind: input, shape index: {}]   ;;  %s5430_s8 = inlined_call_operand.vmem [shape: f32[1,128], index: 8, kind: input, shape index: {}]   ;;  %s5431_s9 = inlined_call_operand.vmem [shape: bf16[128,128], index: 9, kind: input, shape index: {}]   ;;  %s5432_s10 = inlined_call_operand.vmem [shape: f32[1,128], index: 10, kind: input, shape index: {}]   ;;  %s5433_s11 = inlined_call_operand.vmem [shape: bf16[16,128], index: 11, kind: output, shape index: {}]  }
   0x1   :  { %17 = vsyncpa [#allocation5], 0 }
   0x2   :  { %18 = vsyncpa [#allocation8], 0  ;;  %s5126_s17 = smov [#allocation4]   ;;  %s5032_s21 = scalar_lea.hbm %s5425_s3, 32768 }
   0x3   :  { %s40_s18 = sshll.u32 %s5126_s17, 4  ;;  %p5033_p0 = scmp.ne.s32.totalorder %s5425_s3, %s5032_s21  ;;  %s41_s18 = int_to_ptr.vmem [resolvable:$true] %s40_s18 }
   0x4   :  { %p5036_p1 = scmp.lt.u32.totalorder %s5032_s21, %s5425_s3 }
   0x6   :  { %p5038_p2 = pnand %p5036_p1, %p5033_p0 }
   0x8   :  { %5041 = shalt.err (!%p5038_p2)
}
   0x9   :  { %s5042_s26 = scalar_lea.vmem %s41_s18, 32768  ;;  %p5047_p4 = scmp.lt.s32.totalorder %s41_s18, %s41_s18 }
   0xa   :  { %p5043_p3 = scmp.ne.s32.totalorder %s41_s18, %s5042_s26  ;;  %p5048_p5 = scmp.lt.s32.totalorder %s5042_s26, %s5042_s26 }
   0xc   :  { %p5049_p6 = por %p5048_p5, %p5047_p4 }
   0xe   :  { %p5050_p7 = pnand %p5049_p6, %p5043_p3 }
  0x10   :  { %5053 = shalt.err (!%p5050_p7)
}
  0x11   :  { %s5127_s27 = smov 256   ;;  %s5128_s28 = smov 16  }
  0x12   :  { %46 = dma.hbm_to_vmem [thread:$0]  %s5425_s3, 32768, %s41_s18, [#allocation5], %s5127_s27, %s5127_s27, %s5128_s28  }
  0x13   :  { %s5129_s12 = smov [#allocation2]   ;;  %s5054_s16 = scalar_lea.hbm %s5423_s1, 16384 }
  0x14   :  { %s26_s13 = sshll.u32 %s5129_s12, 4  ;;  %p5055_p8 = scmp.ne.s32.totalorder %s5423_s1, %s5054_s16  ;;  %s27_s13 = int_to_ptr.vmem [resolvable:$true] %s26_s13 }
  0x15   :  { %p5058_p9 = scmp.lt.u32.totalorder %s5054_s16, %s5423_s1 }
  0x17   :  { %p5060_p10 = pnand %p5058_p9, %p5055_p8 }
  0x19   :  { %5063 = shalt.err (!%p5060_p10)
}
  0x1a   :  { %s5064_s22 = scalar_lea.vmem %s27_s13, 16384  ;;  %p5069_p12 = scmp.lt.s32.totalorder %s27_s13, %s27_s13 }
  0x1b   :  { %p5065_p11 = scmp.ne.s32.totalorder %s27_s13, %s5064_s22  ;;  %p5070_p13 = scmp.lt.s32.totalorder %s5064_s22, %s5064_s22 }
  0x1d   :  { %p5071_p0 = por %p5070_p13, %p5069_p12 }
  0x1f   :  { %p5072_p1 = pnand %p5071_p0, %p5065_p11 }
  0x21   :  { %5075 = shalt.err (!%p5072_p1)
}
  0x22   :  { %s5130_s3 = smov 512   ;;  %s5131_s18 = smov 32  }
  0x23   :  { %32 = dma.hbm_to_vmem [thread:$0]  %s5423_s1, 16384, %s27_s13, [#allocation3], %s5130_s3, %s5130_s3, %s5131_s18  }
  0x24   :  { %s5132_s25 = smov [#allocation6]   ;;  %s5076_s29 = scalar_lea.hbm %s5427_s5, 8192 }
  0x25   :  { %s54_s26 = sshll.u32 %s5132_s25, 4  ;;  %p5077_p2 = scmp.ne.s32.totalorder %s5427_s5, %s5076_s29  ;;  %s55_s26 = int_to_ptr.vmem [resolvable:$true] %s54_s26 }
  0x26   :  { %p5080_p3 = scmp.lt.u32.totalorder %s5076_s29, %s5427_s5 }
  0x28   :  { %p5082_p4 = pnand %p5080_p3, %p5077_p2 }
  0x2a   :  { %5085 = shalt.err (!%p5082_p4)
}
  0x2b   :  { %s5086_s16 = scalar_lea.vmem %s55_s26, 8192  ;;  %p5091_p6 = scmp.lt.s32.totalorder %s55_s26, %s55_s26 }
  0x2c   :  { %p5087_p5 = scmp.ne.s32.totalorder %s55_s26, %s5086_s16  ;;  %p5092_p7 = scmp.lt.s32.totalorder %s5086_s16, %s5086_s16 }
  0x2e   :  { %p5093_p8 = por %p5092_p7, %p5091_p6 }
  0x30   :  { %p5094_p9 = pnand %p5093_p8, %p5087_p5 }
  0x32   :  { %5097 = shalt.err (!%p5094_p9)
}
  0x33   :  { %s5133_s1 = smov 128   ;;  %s5134_s13 = smov 8  }
  0x34   :  { %60 = dma.hbm_to_vmem [thread:$0]  %s5427_s5, 8192, %s55_s26, [#allocation5], %s5133_s1, %s5133_s1, %s5134_s13  }
  0x35   :  { %s5135_s20 = smov [#allocation7]   ;;  %s5098_s18 = scalar_lea.hbm %s5429_s7, 2048 }
  0x36   :  { %s68_s21 = sshll.u32 %s5135_s20, 4  ;;  %p5099_p10 = scmp.ne.s32.totalorder %s5429_s7, %s5098_s18  ;;  %s69_s21 = int_to_ptr.vmem [resolvable:$true] %s68_s21 }
  0x37   :  { %p5102_p11 = scmp.lt.u32.totalorder %s5098_s18, %s5429_s7 }
  0x39   :  { %p5104_p12 = pnand %p5102_p11, %p5099_p10 }
  0x3b   :  { %5107 = shalt.err (!%p5104_p12)
}
  0x3c   :  { %s5108_s28 = scalar_lea.vmem %s69_s21, 2048  ;;  %p5113_p0 = scmp.lt.s32.totalorder %s69_s21, %s69_s21 }
  0x3d   :  { %p5109_p13 = scmp.ne.s32.totalorder %s69_s21, %s5108_s28  ;;  %p5114_p1 = scmp.lt.s32.totalorder %s5108_s28, %s5108_s28 }
  0x3f   :  { %p5115_p2 = por %p5114_p1, %p5113_p0 }
  0x41   :  { %p5116_p3 = pnand %p5115_p2, %p5109_p13 }
  0x43   :  { %5119 = shalt.err (!%p5116_p3)
}
  0x44   :  { %s5136_s5 = smov 64   ;;  %s5137_s26 = smov 4  }
  0x45   :  { %74 = dma.hbm_to_vmem [thread:$0]  %s5429_s7, 2048, %s69_s21, [#allocation8], %s5136_s5, %s5136_s5, %s5137_s26  }
  0x46   :  { %5120 = dma.done.wait [#allocation3], 16384  }
  0x47   :  { %5121 = vsyncadd [#allocation3], 4294950912 }
  0x48   :  { %5122 = dma.done.wait [#allocation5], 40960  }
  0x49   :  { %5123 = vsyncadd [#allocation5], 4294926336 }
  0x4a   :  { %5124 = dma.done.wait [#allocation8], 2048  }
  0x4b   :  { %5125 = vsyncadd [#allocation8], 4294965248  ;;  %v100_v0 = vld [vmem:[#allocation2] sm:$0xff]  ;;  %v101_v17 = vld [vmem:[#allocation2 + $0x8] sm:$0xff]  ;;  %vm5140_vm0 = vmmov 0  }
  0x4c   :  { %v104_v1 = vld [vmem:[#allocation2 + $0x20] sm:$0xff]  ;;  %v105_v18 = vld [vmem:[#allocation2 + $0x28] sm:$0xff]  ;;  %v97_v20 = vld [vmem:[%s5422_s0 + $0x18] sm:$0xff] }
  0x4d   :  { %v108_v2 = vld [vmem:[#allocation2 + $0x40] sm:$0xff]  ;;  %v3945_v3 = vcombine.high %v100_v0, %v104_v1  ;;  %v3944_v4 = vcombine.low %v100_v0, %v104_v1  ;;  %v95_v19 = vld [vmem:[%s5422_s0 + $0x8] sm:$0xff]  ;;  %v3947_v22 = vcombine.high %v101_v17, %v105_v18  ;;  %v3946_v23 = vcombine.low %v101_v17, %v105_v18 }
  0x4e   :  { %v112_v5 = vld [vmem:[#allocation2 + $0x60] sm:$0xff]  ;;  %v5255_v24 = vpack.c.bf16 %v97_v20, %v95_v19  ;;  %v109_v25 = vld [vmem:[#allocation2 + $0x48] sm:$0xff] }
  0x4f   :  { %v3953_v6 = vcombine.high %v108_v2, %v112_v5  ;;  %v116_v7 = vld [vmem:[#allocation2 + $0x80] sm:$0xff]  ;;  %868 = vmatprep.subr.bf16.mxu0 %v3945_v3  ;;  %v3952_v9 = vcombine.low %v108_v2, %v112_v5  ;;  %v113_v27 = vld [vmem:[#allocation2 + $0x68] sm:$0xff]  ;;  %911 = vmatprep.subr.bf16.mxu1 %v3947_v22 }
  0x50   :  { %v120_v8 = vld [vmem:[#allocation2 + $0xa0] sm:$0xff]  ;;  %869 = vmatpush1.bf16.msra.mxu0 %v3944_v4  ;;  %v117_v28 = vld [vmem:[#allocation2 + $0x88] sm:$0xff]  ;;  %900 = vmatprep.mubr.bf16.mxu0 %v5255_v24  ;;  %v3955_v32 = vcombine.high %v109_v25, %v113_v27  ;;  %v3954_v33 = vcombine.low %v109_v25, %v113_v27 }
  0x51   :  { %870 = vmatprep.subr.bf16.mxu0 %v3953_v6  ;;  %v3961_v10 = vcombine.high %v116_v7, %v120_v8  ;;  %v124_v11 = vld [vmem:[#allocation2 + $0xc0] sm:$0xff]  ;;  %v3960_v13 = vcombine.low %v116_v7, %v120_v8  ;;  %v121_v29 = vld [vmem:[#allocation2 + $0xa8] sm:$0xff]  ;;  %912 = vmatpush1.bf16.msra.mxu1 %v3946_v23 }
  0x52   :  { %v128_v12 = vld [vmem:[#allocation2 + $0xe0] sm:$0xff]  ;;  %943 = vmatprep.mubr.bf16.mxu1 %v5255_v24  ;;  %913 = vmatprep.subr.bf16.mxu1 %v3955_v32  ;;  %v3963_v35 = vcombine.high %v117_v28, %v121_v29  ;;  %v125_v37 = vld [vmem:[#allocation2 + $0xc8] sm:$0xff]  ;;  %v3962_v41 = vcombine.low %v117_v28, %v121_v29 }
  0x53   :  { %v3969_v14 = vcombine.high %v124_v11, %v128_v12  ;;  %v132_v15 = vld [vmem:[#allocation2 + $0x100] sm:$0xff]  ;;  %v3968_v21 = vcombine.low %v124_v11, %v128_v12  ;;  %v129_v38 = vld [vmem:[#allocation2 + $0xe8] sm:$0xff] }
  0x54   :  { %871 = vmatpush1.bf16.msra.mxu0 %v3952_v9  ;;  %v136_v16 = vld [vmem:[#allocation2 + $0x120] sm:$0xff]  ;;  %v3971_v43 = vcombine.high %v125_v37, %v129_v38  ;;  %v133_v45 = vld [vmem:[#allocation2 + $0x108] sm:$0xff]  ;;  %v3970_v49 = vcombine.low %v125_v37, %v129_v38 }
  0x55   :  { %872 = vmatprep.subr.bf16.mxu0 %v3961_v10  ;;  %v3977_v26 = vcombine.high %v132_v15, %v136_v16  ;;  %v140_v30 = vld [vmem:[#allocation2 + $0x140] sm:$0xff]  ;;  %v3976_v34 = vcombine.low %v132_v15, %v136_v16  ;;  %914 = vmatpush1.bf16.msra.mxu1 %v3954_v33  ;;  %v137_v46 = vld [vmem:[#allocation2 + $0x128] sm:$0xff] }
  0x56   :  { %v144_v31 = vld [vmem:[#allocation2 + $0x160] sm:$0xff]  ;;  %915 = vmatprep.subr.bf16.mxu1 %v3963_v35  ;;  %v3979_v51 = vcombine.high %v133_v45, %v137_v46  ;;  %v141_v53 = vld [vmem:[#allocation2 + $0x148] sm:$0xff]  ;;  %v3978_v57 = vcombine.low %v133_v45, %v137_v46 }
  0x57   :  { %v3985_v36 = vcombine.high %v140_v30, %v144_v31  ;;  %v148_v39 = vld [vmem:[#allocation2 + $0x180] sm:$0xff]  ;;  %v3984_v42 = vcombine.low %v140_v30, %v144_v31  ;;  %v145_v54 = vld [vmem:[#allocation2 + $0x168] sm:$0xff] }
  0x58   :  { %873 = vmatpush1.bf16.msra.mxu0 %v3960_v13  ;;  %v152_v40 = vld [vmem:[#allocation2 + $0x1a0] sm:$0xff]  ;;  %v3987_v59 = vcombine.high %v141_v53, %v145_v54  ;;  %v149_v61 = vld [vmem:[#allocation2 + $0x188] sm:$0xff]  ;;  %v3986_v1 = vcombine.low %v141_v53, %v145_v54 }
  0x59   :  { %874 = vmatprep.subr.bf16.mxu0 %v3969_v14  ;;  %v3993_v44 = vcombine.high %v148_v39, %v152_v40  ;;  %v156_v47 = vld [vmem:[#allocation2 + $0x1c0] sm:$0xff]  ;;  %916 = vmatpush1.bf16.msra.mxu1 %v3962_v41  ;;  %v3992_v50 = vcombine.low %v148_v39, %v152_v40  ;;  %v153_v62 = vld [vmem:[#allocation2 + $0x1a8] sm:$0xff] }
  0x5a   :  { %v160_v48 = vld [vmem:[#allocation2 + $0x1e0] sm:$0xff]  ;;  %917 = vmatprep.subr.bf16.mxu1 %v3971_v43  ;;  %v3995_v3 = vcombine.high %v149_v61, %v153_v62  ;;  %v157_v5 = vld [vmem:[#allocation2 + $0x1c8] sm:$0xff]  ;;  %v3994_v9 = vcombine.low %v149_v61, %v153_v62 }
  0x5b   :  { %v4001_v52 = vcombine.high %v156_v47, %v160_v48  ;;  %v164_v55 = vld [vmem:[#allocation2 + $0x200] sm:$0xff]  ;;  %v4000_v58 = vcombine.low %v156_v47, %v160_v48  ;;  %v161_v6 = vld [vmem:[#allocation2 + $0x1e8] sm:$0xff] }
  0x5c   :  { %875 = vmatpush1.bf16.msra.mxu0 %v3968_v21  ;;  %v168_v56 = vld [vmem:[#allocation2 + $0x220] sm:$0xff]  ;;  %v4003_v11 = vcombine.high %v157_v5, %v161_v6  ;;  %v165_v13 = vld [vmem:[#allocation2 + $0x208] sm:$0xff]  ;;  %v4002_v17 = vcombine.low %v157_v5, %v161_v6 }
  0x5d   :  { %876 = vmatprep.subr.bf16.mxu0 %v3977_v26  ;;  %918 = vmatpush1.bf16.msra.mxu1 %v3970_v49  ;;  %v4009_v60 = vcombine.high %v164_v55, %v168_v56  ;;  %v172_v63 = vld [vmem:[#allocation2 + $0x240] sm:$0xff]  ;;  %v4008_v2 = vcombine.low %v164_v55, %v168_v56  ;;  %v169_v14 = vld [vmem:[#allocation2 + $0x228] sm:$0xff]  ;;  %v102_v56 = vld [vmem:[#allocation2 + $0x10] sm:$0xff] }
  0x5e   :  { %919 = vmatprep.subr.bf16.mxu1 %v3979_v51  ;;  %v176_v0 = vld [vmem:[#allocation2 + $0x260] sm:$0xff]  ;;  %v4011_v19 = vcombine.high %v165_v13, %v169_v14  ;;  %v173_v21 = vld [vmem:[#allocation2 + $0x248] sm:$0xff]  ;;  %v4010_v26 = vcombine.low %v165_v13, %v169_v14 }
  0x5f   :  { %v4017_v4 = vcombine.high %v172_v63, %v176_v0  ;;  %v180_v7 = vld [vmem:[#allocation2 + $0x280] sm:$0xff]  ;;  %v4016_v10 = vcombine.low %v172_v63, %v176_v0  ;;  %v177_v22 = vld [vmem:[#allocation2 + $0x268] sm:$0xff] }
  0x60   :  { %877 = vmatpush1.bf16.msra.mxu0 %v3976_v34  ;;  %v184_v8 = vld [vmem:[#allocation2 + $0x2a0] sm:$0xff]  ;;  %v4019_v28 = vcombine.high %v173_v21, %v177_v22  ;;  %v181_v29 = vld [vmem:[#allocation2 + $0x288] sm:$0xff]  ;;  %v4018_v34 = vcombine.low %v173_v21, %v177_v22 }
  0x61   :  { %878 = vmatprep.subr.bf16.mxu0 %v3985_v36  ;;  %920 = vmatpush1.bf16.msra.mxu1 %v3978_v57  ;;  %v4025_v12 = vcombine.high %v180_v7, %v184_v8  ;;  %v188_v15 = vld [vmem:[#allocation2 + $0x2c0] sm:$0xff]  ;;  %v4024_v18 = vcombine.low %v180_v7, %v184_v8  ;;  %v185_v31 = vld [vmem:[#allocation2 + $0x2a8] sm:$0xff]  ;;  %v106_v57 = vld [vmem:[#allocation2 + $0x30] sm:$0xff] }
  0x62   :  { %921 = vmatprep.subr.bf16.mxu1 %v3987_v59  ;;  %v192_v16 = vld [vmem:[#allocation2 + $0x2e0] sm:$0xff]  ;;  %v4027_v36 = vcombine.high %v181_v29, %v185_v31  ;;  %v189_v37 = vld [vmem:[#allocation2 + $0x2c8] sm:$0xff]  ;;  %v96_v59 = vld [vmem:[%s5422_s0 + $0x10] sm:$0xff]  ;;  %v3948_v8 = vcombine.low %v102_v56, %v106_v57 }
  0x63   :  { %v4033_v20 = vcombine.high %v188_v15, %v192_v16  ;;  %v196_v23 = vld [vmem:[#allocation2 + $0x300] sm:$0xff]  ;;  %v4032_v27 = vcombine.low %v188_v15, %v192_v16  ;;  %v193_v39 = vld [vmem:[#allocation2 + $0x2e8] sm:$0xff]  ;;  %v103_v16 = vld [vmem:[#allocation2 + $0x18] sm:$0xff] }
  0x64   :  { %879 = vmatpush1.bf16.msra.mxu0 %v3984_v42  ;;  %v200_v25 = vld [vmem:[#allocation2 + $0x320] sm:$0xff]  ;;  %v4026_v42 = vcombine.low %v181_v29, %v185_v31  ;;  %v197_v45 = vld [vmem:[#allocation2 + $0x308] sm:$0xff]  ;;  %v138_v29 = vld [vmem:[#allocation2 + $0x130] sm:$0xff] }
  0x65   :  { %880 = vmatprep.subr.bf16.mxu0 %v3993_v44  ;;  %922 = vmatpush1.bf16.msra.mxu1 %v3986_v1  ;;  %v4041_v30 = vcombine.high %v196_v23, %v200_v25  ;;  %v204_v32 = vld [vmem:[#allocation2 + $0x340] sm:$0xff]  ;;  %v4040_v35 = vcombine.low %v196_v23, %v200_v25  ;;  %v4035_v44 = vcombine.high %v189_v37, %v193_v39  ;;  %v201_v47 = vld [vmem:[#allocation2 + $0x328] sm:$0xff]  ;;  %v111_v25 = vld [vmem:[#allocation2 + $0x58] sm:$0xff] }
  0x66   :  { %923 = vmatprep.subr.bf16.mxu1 %v3995_v3  ;;  %v208_v33 = vld [vmem:[#allocation2 + $0x360] sm:$0xff]  ;;  %v205_v53 = vld [vmem:[#allocation2 + $0x348] sm:$0xff]  ;;  %v3949_v1 = vcombine.high %v102_v56, %v106_v57  ;;  %v114_v3 = vld [vmem:[#allocation2 + $0x70] sm:$0xff] }
  0x67   :  { %v4049_v38 = vcombine.high %v204_v32, %v208_v33  ;;  %v212_v40 = vld [vmem:[#allocation2 + $0x380] sm:$0xff]  ;;  %v4048_v43 = vcombine.low %v204_v32, %v208_v33  ;;  %v209_v55 = vld [vmem:[#allocation2 + $0x368] sm:$0xff]  ;;  %v119_v33 = vld [vmem:[#allocation2 + $0x98] sm:$0xff] }
  0x68   :  { %881 = vmatpush1.bf16.msra.mxu0 %v3992_v50  ;;  %v216_v41 = vld [vmem:[#allocation2 + $0x3a0] sm:$0xff]  ;;  %v4034_v50 = vcombine.low %v189_v37, %v193_v39  ;;  %v4051_v62 = vcombine.high %v205_v53, %v209_v55  ;;  %v213_v63 = vld [vmem:[#allocation2 + $0x388] sm:$0xff]  ;;  %v4050_v5 = vcombine.low %v205_v53, %v209_v55  ;;  %v146_v37 = vld [vmem:[#allocation2 + $0x170] sm:$0xff] }
  0x69   :  { %882 = vmatprep.subr.bf16.mxu0 %v4001_v52  ;;  %924 = vmatpush1.bf16.msra.mxu1 %v3994_v9  ;;  %v4057_v46 = vcombine.high %v212_v40, %v216_v41  ;;  %v220_v48 = vld [vmem:[#allocation2 + $0x3c0] sm:$0xff]  ;;  %v4056_v51 = vcombine.low %v212_v40, %v216_v41  ;;  %v4043_v52 = vcombine.high %v197_v45, %v201_v47  ;;  %v217_v0 = vld [vmem:[#allocation2 + $0x3a8] sm:$0xff]  ;;  %v150_v40 = vld [vmem:[#allocation2 + $0x190] sm:$0xff] }
  0x6a   :  { %925 = vmatprep.subr.bf16.mxu1 %v4003_v11  ;;  %v224_v49 = vld [vmem:[#allocation2 + $0x3e0] sm:$0xff]  ;;  %v4059_v6 = vcombine.high %v213_v63, %v217_v0  ;;  %v221_v7 = vld [vmem:[#allocation2 + $0x3c8] sm:$0xff]  ;;  %v118_v11 = vld [vmem:[#allocation2 + $0x90] sm:$0xff]  ;;  %v4058_v13 = vcombine.low %v213_v63, %v217_v0 }
  0x6b   :  { %v4065_v54 = vcombine.high %v220_v48, %v224_v49  ;;  %v4064_v61 = vcombine.low %v220_v48, %v224_v49  ;;  %v225_v9 = vld [vmem:[#allocation2 + $0x3e8] sm:$0xff]  ;;  %v154_v41 = vld [vmem:[#allocation2 + $0x1b0] sm:$0xff]  ;;  %v139_v48 = vld [vmem:[#allocation2 + $0x138] sm:$0xff] }
  0x6c   :  { %883 = vmatpush1.bf16.msra.mxu0 %v4000_v58  ;;  %v94_v58 = vld [vmem:[%s5422_s0] sm:$0xff]  ;;  %v4067_v14 = vcombine.high %v221_v7, %v225_v9  ;;  %v4066_v21 = vcombine.low %v221_v7, %v225_v9  ;;  %v147_v55 = vld [vmem:[#allocation2 + $0x178] sm:$0xff]  ;;  %v3996_v56 = vcombine.low %v150_v40, %v154_v41  ;;  %v166_v57 = vld [vmem:[#allocation2 + $0x210] sm:$0xff] }
  0x6d   :  { %884 = vmatprep.subr.bf16.mxu0 %v4009_v60  ;;  %926 = vmatpush1.bf16.msra.mxu1 %v4002_v17  ;;  %v4042_v60 = vcombine.low %v197_v45, %v201_v47  ;;  %v131_v45 = vld [vmem:[#allocation2 + $0xf8] sm:$0xff] }
  0x6e   :  { %927 = vmatprep.subr.bf16.mxu1 %v4011_v19  ;;  %v126_v19 = vld [vmem:[#allocation2 + $0xd0] sm:$0xff]  ;;  %v135_v47 = vld [vmem:[#allocation2 + $0x118] sm:$0xff] }
  0x6f   :  { %v155_v63 = vld [vmem:[#allocation2 + $0x1b8] sm:$0xff] }
  0x70   :  { %885 = vmatpush1.bf16.msra.mxu0 %v4008_v2  ;;  %v110_v2 = vld [vmem:[#allocation2 + $0x50] sm:$0xff]  ;;  %v159_v7 = vld [vmem:[#allocation2 + $0x1d8] sm:$0xff] }
  0x71   :  { %886 = vmatprep.subr.bf16.mxu0 %v4017_v4  ;;  %928 = vmatpush1.bf16.msra.mxu1 %v4010_v26  ;;  %v5265_v4 = vpack.c.bf16 %v96_v59, %v94_v58  ;;  %v3956_v15 = vcombine.low %v110_v2, %v114_v3  ;;  %v170_v58 = vld [vmem:[#allocation2 + $0x230] sm:$0xff]  ;;  %v3983_v59 = vcombine.high %v135_v47, %v139_v48 }
  0x72   :  { %929 = vmatprep.subr.bf16.mxu1 %v4019_v28  ;;  %v134_v28 = vld [vmem:[#allocation2 + $0x110] sm:$0xff]  ;;  %v4012_v9 = vcombine.low %v166_v57, %v170_v58 }
  0x73   :  { %v3980_v39 = vcombine.low %v134_v28, %v138_v29 }
  0x74   :  { %887 = vmatpush1.bf16.msra.mxu0 %v4016_v10  ;;  %v3957_v10 = vcombine.high %v110_v2, %v114_v3  ;;  %v178_v2 = vld [vmem:[#allocation2 + $0x270] sm:$0xff] }
  0x75   :  { %888 = vmatprep.subr.bf16.mxu0 %v4025_v12  ;;  %930 = vmatpush1.bf16.msra.mxu1 %v4018_v34  ;;  %v122_v12 = vld [vmem:[#allocation2 + $0xb0] sm:$0xff]  ;;  %v3981_v34 = vcombine.high %v134_v28, %v138_v29 }
  0x76   :  { %931 = vmatprep.subr.bf16.mxu1 %v4027_v36  ;;  %v3965_v17 = vcombine.high %v118_v11, %v122_v12  ;;  %v3964_v22 = vcombine.low %v118_v11, %v122_v12  ;;  %v142_v36 = vld [vmem:[#allocation2 + $0x150] sm:$0xff] }
  0x77   :  { %v3988_v49 = vcombine.low %v142_v36, %v146_v37  ;;  %v186_v11 = vld [vmem:[#allocation2 + $0x2b0] sm:$0xff] }
  0x78   :  { %889 = vmatpush1.bf16.msra.mxu0 %v4024_v18  ;;  %v107_v18 = vld [vmem:[#allocation2 + $0x38] sm:$0xff]  ;;  %v202_v28 = vld [vmem:[#allocation2 + $0x330] sm:$0xff] }
  0x79   :  { %890 = vmatprep.subr.bf16.mxu0 %v4033_v20  ;;  %932 = vmatpush1.bf16.msra.mxu1 %v4026_v42  ;;  %v130_v20 = vld [vmem:[#allocation2 + $0xf0] sm:$0xff]  ;;  %v3951_v23 = vcombine.high %v103_v16, %v107_v18 }
  0x7a   :  { %933 = vmatprep.subr.bf16.mxu1 %v4035_v44  ;;  %v3973_v26 = vcombine.high %v126_v19, %v130_v20  ;;  %v3972_v31 = vcombine.low %v126_v19, %v130_v20  ;;  %v3989_v44 = vcombine.high %v142_v36, %v146_v37  ;;  %v194_v19 = vld [vmem:[#allocation2 + $0x2f0] sm:$0xff] }
  0x7b   :  { %v210_v36 = vld [vmem:[#allocation2 + $0x370] sm:$0xff] }
  0x7c   :  { %891 = vmatpush1.bf16.msra.mxu0 %v4032_v27  ;;  %v115_v27 = vld [vmem:[#allocation2 + $0x78] sm:$0xff] }
  0x7d   :  { %892 = vmatprep.subr.bf16.mxu0 %v4041_v30  ;;  %934 = vmatpush1.bf16.msra.mxu1 %v4034_v50  ;;  %v3950_v30 = vcombine.low %v103_v16, %v107_v18  ;;  %v3959_v32 = vcombine.high %v111_v25, %v115_v27  ;;  %v158_v50 = vld [vmem:[#allocation2 + $0x1d0] sm:$0xff]  ;;  %v171_v16 = vld [vmem:[#allocation2 + $0x238] sm:$0xff] }
  0x7e   :  { %935 = vmatprep.subr.bf16.mxu1 %v4043_v52  ;;  %v3997_v52 = vcombine.high %v150_v40, %v154_v41  ;;  %v190_v18 = vld [vmem:[#allocation2 + $0x2d0] sm:$0xff]  ;;  %v191_v40 = vld [vmem:[#allocation2 + $0x2d8] sm:$0xff] }
  0x7f   :  { %v195_v41 = vld [vmem:[#allocation2 + $0x2f8] sm:$0xff] }
  0x80   :  { %893 = vmatpush1.bf16.msra.mxu0 %v4040_v35  ;;  %v123_v35 = vld [vmem:[#allocation2 + $0xb8] sm:$0xff] }
  0x81   :  { %894 = vmatprep.subr.bf16.mxu0 %v4049_v38  ;;  %936 = vmatpush1.bf16.msra.mxu1 %v4042_v60  ;;  %v3958_v38 = vcombine.low %v111_v25, %v115_v27  ;;  %v3967_v42 = vcombine.high %v119_v33, %v123_v35  ;;  %v179_v25 = vld [vmem:[#allocation2 + $0x278] sm:$0xff]  ;;  %v198_v27 = vld [vmem:[#allocation2 + $0x310] sm:$0xff] }
  0x82   :  { %937 = vmatprep.subr.bf16.mxu1 %v4051_v62  ;;  %v151_v62 = vld [vmem:[#allocation2 + $0x198] sm:$0xff] }
  0x83   :  { %v3999_v12 = vcombine.high %v151_v62, %v155_v63 }
  0x84   :  { %895 = vmatpush1.bf16.msra.mxu0 %v4048_v43  ;;  %v127_v43 = vld [vmem:[#allocation2 + $0xd8] sm:$0xff] }
  0x85   :  { %896 = vmatprep.subr.bf16.mxu0 %v4057_v46  ;;  %938 = vmatpush1.bf16.msra.mxu1 %v4050_v5  ;;  %v3966_v46 = vcombine.low %v119_v33, %v123_v35  ;;  %v3974_v53 = vcombine.low %v127_v43, %v131_v45  ;;  %v4013_v5 = vcombine.high %v166_v57, %v170_v58  ;;  %v187_v33 = vld [vmem:[#allocation2 + $0x2b8] sm:$0xff]  ;;  %v206_v35 = vld [vmem:[#allocation2 + $0x350] sm:$0xff] }
  0x86   :  { %939 = vmatprep.subr.bf16.mxu1 %v4059_v6 }
  0x88   :  { %897 = vmatpush1.bf16.msra.mxu0 %v4056_v51  ;;  %v162_v51 = vld [vmem:[#allocation2 + $0x1f0] sm:$0xff] }
  0x89   :  { %898 = vmatprep.subr.bf16.mxu0 %v4065_v54  ;;  %940 = vmatpush1.bf16.msra.mxu1 %v4058_v13  ;;  %v143_v54 = vld [vmem:[#allocation2 + $0x158] sm:$0xff]  ;;  %v4005_v60 = vcombine.high %v158_v50, %v162_v51  ;;  %v4004_v0 = vcombine.low %v158_v50, %v162_v51  ;;  %v4052_v50 = vcombine.low %v206_v35, %v210_v36  ;;  %v222_v51 = vld [vmem:[#allocation2 + $0x3d0] sm:$0xff] }
  0x8a   :  { %941 = vmatprep.subr.bf16.mxu1 %v4067_v14  ;;  %v3991_v3 = vcombine.high %v143_v54, %v147_v55  ;;  %v3990_v6 = vcombine.low %v143_v54, %v147_v55  ;;  %v3998_v14 = vcombine.low %v151_v62, %v155_v63  ;;  %v4038_v54 = vcombine.low %v191_v40, %v195_v41  ;;  %v207_v55 = vld [vmem:[#allocation2 + $0x358] sm:$0xff]  ;;  %v4522_v63 = vld [vmem:[#allocation4 + $0x4] ss:$16 sps:$4 sm:$0xff]  }
  0x8b   :  { %v219_v62 = vld [vmem:[#allocation2 + $0x3b8] sm:$0xff] }
  0x8c   :  { %899 = vmatpush1.bf16.msra.mxu0 %v4064_v61  ;;  %v3982_v61 = vcombine.low %v135_v47, %v139_v48  ;;  %v199_v48 = vld [vmem:[#allocation2 + $0x318] sm:$0xff] }
  0x8d   :  { %954 = vmatprep.subr.bf16.mxu0 %v3949_v1  ;;  %942 = vmatpush1.bf16.msra.mxu1 %v4066_v21  ;;  %v174_v1 = vld [vmem:[#allocation2 + $0x250] sm:$0xff] }
  0x8e   :  { %997 = vmatprep.subr.bf16.mxu1 %v3951_v23  ;;  %v4021_v13 = vcombine.high %v174_v1, %v178_v2  ;;  %v175_v23 = vld [vmem:[#allocation2 + $0x258] sm:$0xff] }
  0x8f   :  { %901 = vmatmul.mubr.bf16.vlgmr.msra.gmra.mrb[0].mxu0 %v5265_v4  ;;  %v4023_v37 = vcombine.high %v175_v23, %v179_v25 }
  0x90   :  { %955 = vmatpush1.bf16.msra.mxu0 %v3948_v8  ;;  %986 = vmatprep.mubr.bf16.mxu0 %v5255_v24  ;;  %v163_v8 = vld [vmem:[#allocation2 + $0x1f8] sm:$0xff] }
  0x91   :  { %956 = vmatprep.subr.bf16.mxu0 %v3957_v10  ;;  %944 = vmatmul.mubr.bf16.vlgmr.msra.gmra.mrb[0].mxu1 %v5265_v4  ;;  %v182_v10 = vld [vmem:[#allocation2 + $0x290] sm:$0xff]  ;;  %v4007_v20 = vcombine.high %v159_v7, %v163_v8 }
  0x92   :  { %998 = vmatpush1.bf16.msra.mxu1 %v3950_v30  ;;  %1029 = vmatprep.mubr.bf16.mxu1 %v5255_v24  ;;  %v3975_v24 = vcombine.high %v127_v43, %v131_v45  ;;  %v4029_v21 = vcombine.high %v182_v10, %v186_v11  ;;  %v4037_v30 = vcombine.high %v190_v18, %v194_v19  ;;  %v214_v43 = vld [vmem:[#allocation2 + $0x390] sm:$0xff] }
  0x93   :  { %999 = vmatprep.subr.bf16.mxu1 %v3959_v32  ;;  %v183_v32 = vld [vmem:[#allocation2 + $0x298] sm:$0xff] }
  0x94   :  { %957 = vmatpush1.bf16.msra.mxu0 %v3956_v15  ;;  %v167_v15 = vld [vmem:[#allocation2 + $0x218] sm:$0xff]  ;;  %v4031_v45 = vcombine.high %v183_v32, %v187_v33  ;;  %v4030_v47 = vcombine.low %v183_v32, %v187_v33  ;;  %v4556_v32 = vld [vmem:[#allocation4 + $0xc0] ss:$16 sps:$4 sm:$0xff]  }
  0x95   :  { %958 = vmatprep.subr.bf16.mxu0 %v3965_v17  ;;  %v4020_v17 = vcombine.low %v174_v1, %v178_v2  ;;  %v4015_v29 = vcombine.high %v167_v15, %v171_v16  ;;  %v4520_v2 = vld [vmem:[#allocation4] ss:$16 sps:$4 sm:$0xff]   ;;  %v4547_v33 = vld [vmem:[#allocation4 + $0x88] ss:$16 sps:$4 sm:$0xff]  }
  0x96   :  { %1000 = vmatpush1.bf16.msra.mxu1 %v3958_v38  ;;  %v4045_v38 = vcombine.high %v198_v27, %v202_v28 }
  0x97   :  { %1001 = vmatprep.subr.bf16.mxu1 %v3967_v42  ;;  %v4044_v42 = vcombine.low %v198_v27, %v202_v28  ;;  %v4543_v27 = vld [vmem:[#allocation4 + $0x6c] ss:$16 sps:$4 sm:$0xff]   ;;  %v4550_v28 = vld [vmem:[#allocation4 + $0xa0] ss:$16 sps:$4 sm:$0xff]  }
  0x98   :  { %959 = vmatpush1.bf16.msra.mxu0 %v3964_v22  ;;  %v4006_v22 = vcombine.low %v159_v7, %v163_v8  ;;  %v4528_v7 = vld [vmem:[#allocation4 + $0x24] ss:$16 sps:$4 sm:$0xff]  }
  0x99   :  { %960 = vmatprep.subr.bf16.mxu0 %v3973_v26  ;;  %v4028_v26 = vcombine.low %v182_v10, %v186_v11  ;;  %v4534_v11 = vld [vmem:[#allocation4 + $0x44] ss:$16 sps:$4 sm:$0xff]  }
  0x9a   :  { %1002 = vmatpush1.bf16.msra.mxu1 %v3966_v46  ;;  %v4053_v46 = vcombine.high %v206_v35, %v210_v36  ;;  %v4562_v35 = vld [vmem:[#allocation4 + $0xe0] ss:$16 sps:$4 sm:$0xff]   ;;  %v4570_v36 = vld [vmem:[#allocation4 + $0x104] ss:$16 sps:$4 sm:$0xff]  }
  0x9b   :  { %1003 = vmatprep.subr.bf16.mxu1 %v3975_v24  ;;  %v226_v24 = vld [vmem:[#allocation2 + $0x3f0] sm:$0xff] }
  0x9c   :  { %961 = vmatpush1.bf16.msra.mxu0 %v3972_v31  ;;  %v4014_v31 = vcombine.low %v167_v15, %v171_v16  ;;  %v4540_v16 = vld [vmem:[#allocation4 + $0x64] ss:$16 sps:$4 sm:$0xff]  }
  0x9d   :  { %962 = vmatprep.subr.bf16.mxu0 %v3981_v34  ;;  %v4036_v34 = vcombine.low %v190_v18, %v194_v19  ;;  %v4531_v18 = vld [vmem:[#allocation4 + $0x2c] ss:$16 sps:$4 sm:$0xff]   ;;  %v4538_v19 = vld [vmem:[#allocation4 + $0x60] ss:$16 sps:$4 sm:$0xff]  }
  0x9e   :  { %1004 = vmatpush1.bf16.msra.mxu1 %v3974_v53 }
  0x9f   :  { %1005 = vmatprep.subr.bf16.mxu1 %v3983_v59  ;;  %v4069_v59 = vcombine.high %v222_v51, %v226_v24 }
  0xa0   :  { %963 = vmatpush1.bf16.msra.mxu0 %v3980_v39  ;;  %v4022_v39 = vcombine.low %v175_v23, %v179_v25  ;;  %v4544_v23 = vld [vmem:[#allocation4 + $0x80] ss:$16 sps:$4 sm:$0xff]   ;;  %v4552_v25 = vld [vmem:[#allocation4 + $0xa4] ss:$16 sps:$4 sm:$0xff]  }
  0xa1   :  { %964 = vmatprep.subr.bf16.mxu0 %v3989_v44  ;;  %v218_v44 = vld [vmem:[#allocation2 + $0x3b0] sm:$0xff] }
  0xa2   :  { %1006 = vmatpush1.bf16.msra.mxu1 %v3982_v61  ;;  %v4061_v53 = vcombine.high %v214_v43, %v218_v44  ;;  %v4060_v57 = vcombine.low %v214_v43, %v218_v44  ;;  %v215_v61 = vld [vmem:[#allocation2 + $0x398] sm:$0xff]  ;;  %v4574_v43 = vld [vmem:[#allocation4 + $0x120] ss:$16 sps:$4 sm:$0xff]   ;;  %v4582_v44 = vld [vmem:[#allocation4 + $0x144] ss:$16 sps:$4 sm:$0xff]  }
  0xa3   :  { %1007 = vmatprep.subr.bf16.mxu1 %v3991_v3  ;;  %v4063_v8 = vcombine.high %v215_v61, %v219_v62  ;;  %v4062_v10 = vcombine.low %v215_v61, %v219_v62  ;;  %v4597_v61 = vld [vmem:[#allocation4 + $0x18c] ss:$16 sps:$4 sm:$0xff]   ;;  %v4604_v62 = vld [vmem:[#allocation4 + $0x1c0] ss:$16 sps:$4 sm:$0xff]  }
  0xa4   :  { %965 = vmatpush1.bf16.msra.mxu0 %v3988_v49  ;;  %v203_v49 = vld [vmem:[#allocation2 + $0x338] sm:$0xff] }
  0xa5   :  { %966 = vmatprep.subr.bf16.mxu0 %v3997_v52  ;;  %v4039_v52 = vcombine.high %v191_v40, %v195_v41  ;;  %v4047_v58 = vcombine.high %v199_v48, %v203_v49  ;;  %v4576_v40 = vld [vmem:[#allocation4 + $0x124] ss:$16 sps:$4 sm:$0xff]   ;;  %v4559_v41 = vld [vmem:[#allocation4 + $0xc8] ss:$16 sps:$4 sm:$0xff]  }
  0xa6   :  { %1008 = vmatpush1.bf16.msra.mxu1 %v3990_v6  ;;  %v227_v6 = vld [vmem:[#allocation2 + $0x3f8] sm:$0xff] }
  0xa7   :  { %1009 = vmatprep.subr.bf16.mxu1 %v3999_v12 }
  0xa8   :  { %967 = vmatpush1.bf16.msra.mxu0 %v3996_v56  ;;  %v211_v56 = vld [vmem:[#allocation2 + $0x378] sm:$0xff] }
  0xa9   :  { %968 = vmatprep.subr.bf16.mxu0 %v4005_v60  ;;  %v4046_v60 = vcombine.low %v199_v48, %v203_v49  ;;  %v4055_v1 = vcombine.high %v207_v55, %v211_v56  ;;  %v4054_v3 = vcombine.low %v207_v55, %v211_v56  ;;  %v4588_v48 = vld [vmem:[#allocation4 + $0x164] ss:$16 sps:$4 sm:$0xff]   ;;  %v4571_v49 = vld [vmem:[#allocation4 + $0x108] ss:$16 sps:$4 sm:$0xff]  }
  0xaa   :  { %1010 = vmatpush1.bf16.msra.mxu1 %v3998_v14  ;;  %v4532_v14 = vld [vmem:[#allocation4 + $0x40] ss:$16 sps:$4 sm:$0xff]   ;;  %v4600_v55 = vld [vmem:[#allocation4 + $0x1a4] ss:$16 sps:$4 sm:$0xff]   ;;  %v4583_v56 = vld [vmem:[#allocation4 + $0x148] ss:$16 sps:$4 sm:$0xff]  }
  0xab   :  { %1011 = vmatprep.subr.bf16.mxu1 %v4007_v20  ;;  %v4546_v20 = vld [vmem:[#allocation4 + $0x84] ss:$16 sps:$4 sm:$0xff]  }
  0xac   :  { %969 = vmatpush1.bf16.msra.mxu0 %v4004_v0  ;;  %v4068_v0 = vcombine.low %v222_v51, %v226_v24  ;;  %v4586_v51 = vld [vmem:[#allocation4 + $0x160] ss:$16 sps:$4 sm:$0xff]   ;;  %v4594_v24 = vld [vmem:[#allocation4 + $0x184] ss:$16 sps:$4 sm:$0xff]  }
  0xad   :  { %970 = vmatprep.subr.bf16.mxu0 %v4013_v5  ;;  %v223_v5 = vld [vmem:[#allocation2 + $0x3d8] sm:$0xff] }
  0xae   :  { %1012 = vmatpush1.bf16.msra.mxu1 %v4006_v22  ;;  %v4071_v12 = vcombine.high %v223_v5, %v227_v6  ;;  %v4070_v15 = vcombine.low %v223_v5, %v227_v6  ;;  %v4537_v22 = vld [vmem:[#allocation4 + $0x4c] ss:$16 sps:$4 sm:$0xff]   ;;  %v4601_v5 = vld [vmem:[#allocation4 + $0x1a8] ss:$16 sps:$4 sm:$0xff]  }
  0xaf   :  { %1013 = vmatprep.subr.bf16.mxu1 %v4015_v29  ;;  %v4558_v29 = vld [vmem:[#allocation4 + $0xc4] ss:$16 sps:$4 sm:$0xff]   ;;  %v4609_v6 = vld [vmem:[#allocation4 + $0x1cc] ss:$16 sps:$4 sm:$0xff]  }
  0xb0   :  { %971 = vmatpush1.bf16.msra.mxu0 %v4012_v9  ;;  %v4526_v9 = vld [vmem:[#allocation4 + $0x20] ss:$16 sps:$4 sm:$0xff]  }
  0xb1   :  { %972 = vmatprep.subr.bf16.mxu0 %v4021_v13  ;;  %v4525_v13 = vld [vmem:[#allocation4 + $0xc] ss:$16 sps:$4 sm:$0xff]  }
  0xb2   :  { %1014 = vmatpush1.bf16.msra.mxu1 %v4014_v31  ;;  %v4549_v31 = vld [vmem:[#allocation4 + $0x8c] ss:$16 sps:$4 sm:$0xff]  }
  0xb3   :  { %1015 = vmatprep.subr.bf16.mxu1 %v4023_v37  ;;  %v4553_v37 = vld [vmem:[#allocation4 + $0xa8] ss:$16 sps:$4 sm:$0xff]  }
  0xb4   :  { %973 = vmatpush1.bf16.msra.mxu0 %v4020_v17  ;;  %v4523_v17 = vld [vmem:[#allocation4 + $0x8] ss:$16 sps:$4 sm:$0xff]  }
  0xb5   :  { %974 = vmatprep.subr.bf16.mxu0 %v4029_v21  ;;  %v4529_v21 = vld [vmem:[#allocation4 + $0x28] ss:$16 sps:$4 sm:$0xff]  }
  0xb6   :  { %1016 = vmatpush1.bf16.msra.mxu1 %v4022_v39  ;;  %v4568_v39 = vld [vmem:[#allocation4 + $0x100] ss:$16 sps:$4 sm:$0xff]  }
  0xb7   :  { %1017 = vmatprep.subr.bf16.mxu1 %v4031_v45  ;;  %v4565_v45 = vld [vmem:[#allocation4 + $0xe8] ss:$16 sps:$4 sm:$0xff]  }
  0xb8   :  { %975 = vmatpush1.bf16.msra.mxu0 %v4028_v26  ;;  %v4535_v26 = vld [vmem:[#allocation4 + $0x48] ss:$16 sps:$4 sm:$0xff]  }
  0xb9   :  { %976 = vmatprep.subr.bf16.mxu0 %v4037_v30  ;;  %v4541_v30 = vld [vmem:[#allocation4 + $0x68] ss:$16 sps:$4 sm:$0xff]  }
  0xba   :  { %1018 = vmatpush1.bf16.msra.mxu1 %v4030_v47  ;;  %v4580_v47 = vld [vmem:[#allocation4 + $0x140] ss:$16 sps:$4 sm:$0xff]  }
  0xbb   :  { %1019 = vmatprep.subr.bf16.mxu1 %v4039_v52  ;;  %v4577_v52 = vld [vmem:[#allocation4 + $0x128] ss:$16 sps:$4 sm:$0xff]  }
  0xbc   :  { %977 = vmatpush1.bf16.msra.mxu0 %v4036_v34  ;;  %v4555_v34 = vld [vmem:[#allocation4 + $0xac] ss:$16 sps:$4 sm:$0xff]  }
  0xbd   :  { %978 = vmatprep.subr.bf16.mxu0 %v4045_v38  ;;  %v4561_v38 = vld [vmem:[#allocation4 + $0xcc] ss:$16 sps:$4 sm:$0xff]  }
  0xbe   :  { %1020 = vmatpush1.bf16.msra.mxu1 %v4038_v54  ;;  %v4592_v54 = vld [vmem:[#allocation4 + $0x180] ss:$16 sps:$4 sm:$0xff]  }
  0xbf   :  { %1021 = vmatprep.subr.bf16.mxu1 %v4047_v58  ;;  %v4598_v58 = vld [vmem:[#allocation4 + $0x1a0] ss:$16 sps:$4 sm:$0xff]  }
  0xc0   :  { %979 = vmatpush1.bf16.msra.mxu0 %v4044_v42  ;;  %v4567_v42 = vld [vmem:[#allocation4 + $0xec] ss:$16 sps:$4 sm:$0xff]  }
  0xc1   :  { %980 = vmatprep.subr.bf16.mxu0 %v4053_v46  ;;  %v4573_v46 = vld [vmem:[#allocation4 + $0x10c] ss:$16 sps:$4 sm:$0xff]  }
  0xc2   :  { %1022 = vmatpush1.bf16.msra.mxu1 %v4046_v60  ;;  %v4589_v60 = vld [vmem:[#allocation4 + $0x168] ss:$16 sps:$4 sm:$0xff]  }
  0xc3   :  { %1023 = vmatprep.subr.bf16.mxu1 %v4055_v1  ;;  %v4603_v1 = vld [vmem:[#allocation4 + $0x1ac] ss:$16 sps:$4 sm:$0xff]  }
  0xc4   :  { %981 = vmatpush1.bf16.msra.mxu0 %v4052_v50  ;;  %v4579_v50 = vld [vmem:[#allocation4 + $0x12c] ss:$16 sps:$4 sm:$0xff]  }
  0xc5   :  { %982 = vmatprep.subr.bf16.mxu0 %v4061_v53  ;;  %v4585_v53 = vld [vmem:[#allocation4 + $0x14c] ss:$16 sps:$4 sm:$0xff]  }
  0xc6   :  { %1024 = vmatpush1.bf16.msra.mxu1 %v4054_v3  ;;  %v4618_v3 = vld [vmem:[#allocation4 + $0x204] ss:$16 sps:$4 sm:$0xff]  }
  0xc7   :  { %1025 = vmatprep.subr.bf16.mxu1 %v4063_v8  ;;  %v4615_v8 = vld [vmem:[#allocation4 + $0x1ec] ss:$16 sps:$4 sm:$0xff]  }
  0xc8   :  { %983 = vmatpush1.bf16.msra.mxu0 %v4060_v57  ;;  %v4591_v57 = vld [vmem:[#allocation4 + $0x16c] ss:$16 sps:$4 sm:$0xff]  }
  0xc9   :  { %984 = vmatprep.subr.bf16.mxu0 %v4069_v59  ;;  %v4606_v59 = vld [vmem:[#allocation4 + $0x1c4] ss:$16 sps:$4 sm:$0xff]  }
  0xca   :  { %1026 = vmatpush1.bf16.msra.mxu1 %v4062_v10  ;;  %v4621_v10 = vld [vmem:[#allocation4 + $0x20c] ss:$16 sps:$4 sm:$0xff]  }
  0xcb   :  { %1027 = vmatprep.subr.bf16.mxu1 %v4071_v12 }
  0xcc   :  { %985 = vmatpush1.bf16.msra.mxu0 %v4068_v0  ;;  %v4595_v0 = vld [vmem:[#allocation4 + $0x188] ss:$16 sps:$4 sm:$0xff]  }
  0xcd   :  { %2706 = vmatprep.subr.bf16.mxu0 %v4522_v63  ;;  %v4612_v63 = vld [vmem:[#allocation4 + $0x1e4] ss:$16 sps:$4 sm:$0xff]  }
  0xce   :  { %1028 = vmatpush1.bf16.msra.mxu1 %v4070_v15 }
  0xcf   :  { %987 = vmatmul.mubr.bf16.vlgmr.msra.gmra.mrb[4].mxu0 %v5265_v4  ;;  %2878 = vmatprep.subr.bf16.mxu1 %v4525_v13 }
  0xd0   :  { %2707 = vmatpush1.bf16.msra.mxu0 %v4520_v2  ;;  %v4610_v2 = vld [vmem:[#allocation4 + $0x1e0] ss:$16 sps:$4 sm:$0xff]  }
  0xd1   :  { %2708 = vmatprep.subr.bf16.mxu0 %v4528_v7  ;;  %1030 = vmatmul.mubr.bf16.vlgmr.msra.gmra.mrb[4].mxu1 %v5265_v4  ;;  %v4564_v4 = vld [vmem:[#allocation4 + $0xe4] ss:$16 sps:$4 sm:$0xff]   ;;  %v4607_v7 = vld [vmem:[#allocation4 + $0x1c8] ss:$16 sps:$4 sm:$0xff]  }
  0xd2   :  { %2879 = vmatpush1.bf16.msra.mxu1 %v4523_v17 }
  0xd3   :  { %2880 = vmatprep.subr.bf16.mxu1 %v4531_v18 }
  0xd4   :  { %2709 = vmatpush1.bf16.msra.mxu0 %v4526_v9  ;;  %v4613_v9 = vld [vmem:[#allocation4 + $0x1e8] ss:$16 sps:$4 sm:$0xff]  }
  0xd5   :  { %2710 = vmatprep.subr.bf16.mxu0 %v4534_v11  ;;  %v1050_v11 = vlaneseq }
  0xd6   :  { %2881 = vmatpush1.bf16.msra.mxu1 %v4529_v21 }
  0xd7   :  { %2882 = vmatprep.subr.bf16.mxu1 %v4537_v22  ;;  %v5273_v12 = vshrl.u32 %v1050_v11, 7  ;;  %v4663_v11 = vld [vmem:[#allocation4 + $0x2ec] ss:$16 sps:$4 sm:$0xff]  }
  0xd8   :  { %2711 = vmatpush1.bf16.msra.mxu0 %v4532_v14  ;;  %v5281_v14 = vld [vmem:[%s5424_s2] sm:$0xff] }
  0xd9   :  { %2712 = vmatprep.subr.bf16.mxu0 %v4540_v16  ;;  %v5276_v13 = vsub.s32 0, %v5273_v12  ;;  %v5284_v15 = vsub.s32 1, %v5273_v12  ;;  %v1064_v21 = vsub.s32 3, %v5273_v12 }
  0xda   :  { %2883 = vmatpush1.bf16.msra.mxu1 %v4535_v26 }
  0xdb   :  { %2884 = vmatprep.subr.bf16.mxu1 %v4543_v27  ;;  %v1053_v16 = vrot.slane %v5281_v14, %v5276_v13  ;;  %v1057_v17 = vrot.slane %v5281_v14, %v5284_v15  ;;  %v1065_v27 = vrot.slane %v5281_v14, %v1064_v21 }
  0xdc   :  { %2713 = vmatpush1.bf16.msra.mxu0 %v4538_v19 }
  0xdd   :  { %2714 = vmatprep.subr.bf16.mxu0 %v4546_v20  ;;  %v1090_v18 = vpack.c.bf16 %v1053_v16, %v1053_v16  ;;  %v1091_v19 = vpack.c.bf16 %v1057_v17, %v1057_v17  ;;  %v4658_v16 = vld [vmem:[#allocation4 + $0x2e0] ss:$16 sps:$4 sm:$0xff]   ;;  %v4661_v17 = vld [vmem:[#allocation4 + $0x2e8] ss:$16 sps:$4 sm:$0xff]  }
  0xde   :  { %2885 = vmatpush1.bf16.msra.mxu1 %v4541_v30 }
  0xdf   :  { %2886 = vmatprep.subr.bf16.mxu1 %v4549_v31  ;;  %v1099_v20 = vpack.i.b16 %v1090_v18, %v1090_v18  ;;  %v1106_v22 = vpack.i.b16 %v1091_v19, %v1091_v19  ;;  %v4666_v18 = vld [vmem:[#allocation4 + $0x304] ss:$16 sps:$4 sm:$0xff]   ;;  %v4669_v19 = vld [vmem:[#allocation4 + $0x30c] ss:$16 sps:$4 sm:$0xff]  }
  0xe0   :  { %2715 = vmatpush1.bf16.msra.mxu0 %v4544_v23 }
  0xe1   :  { %2716 = vmatprep.subr.bf16.mxu0 %v4552_v25  ;;  %v1104_v26 = vrot.slane %v1099_v20, %v5276_v13  ;;  %v4664_v20 = vld [vmem:[#allocation4 + $0x300] ss:$16 sps:$4 sm:$0xff]  }
  0xe2   :  { %2887 = vmatpush1.bf16.msra.mxu1 %v4547_v33  ;;  %v1093_v33 = vpack.c.bf16 %v1065_v27, %v1065_v27  ;;  %v4673_v27 = vld [vmem:[#allocation4 + $0x328] ss:$16 sps:$4 sm:$0xff]  }
  0xe3   :  { %2888 = vmatprep.subr.bf16.mxu1 %v4555_v34 }
  0xe4   :  { %2717 = vmatpush1.bf16.msra.mxu0 %v4550_v28 }
  0xe5   :  { %2718 = vmatprep.subr.bf16.mxu0 %v4558_v29  ;;  %v1111_v29 = vrot.slane %v1106_v22, %v5276_v13  ;;  %v4667_v22 = vld [vmem:[#allocation4 + $0x308] ss:$16 sps:$4 sm:$0xff]  }
  0xe6   :  { %2889 = vmatpush1.bf16.msra.mxu1 %v4553_v37  ;;  %v4616_v37 = vld [vmem:[#allocation4 + $0x200] ss:$16 sps:$4 sm:$0xff]  }
  0xe7   :  { %2890 = vmatprep.subr.bf16.mxu1 %v4561_v38  ;;  %v4619_v38 = vld [vmem:[#allocation4 + $0x208] ss:$16 sps:$4 sm:$0xff]  }
  0xe8   :  { %2719 = vmatpush1.bf16.msra.mxu0 %v4556_v32 }
  0xe9   :  { %2720 = vmatprep.subr.bf16.mxu0 %v4564_v4 }
  0xea   :  { %2891 = vmatpush1.bf16.msra.mxu1 %v4559_v41  ;;  %v4627_v41 = vld [vmem:[#allocation4 + $0x22c] ss:$16 sps:$4 sm:$0xff]  }
  0xeb   :  { %2892 = vmatprep.subr.bf16.mxu1 %v4567_v42  ;;  %v1120_v42 = vpack.i.b16 %v1093_v33, %v1093_v33  ;;  %v1060_v33 = vsub.s32 2, %v5273_v12 }
  0xec   :  { %2721 = vmatpush1.bf16.msra.mxu0 %v4562_v35  ;;  %v5138_v35 = vmov 0  }
  0xed   :  { %2722 = vmatprep.subr.bf16.mxu0 %v4570_v36 }
  0xee   :  { %2893 = vmatpush1.bf16.msra.mxu1 %v4565_v45  ;;  %v4625_v45 = vld [vmem:[#allocation4 + $0x228] ss:$16 sps:$4 sm:$0xff]  }
  0xef   :  { %2894 = vmatprep.subr.bf16.mxu1 %v4573_v46 }
  0xf0   :  { %2723 = vmatpush1.bf16.msra.mxu0 %v4568_v39 }
  0xf1   :  { %2724 = vmatprep.subr.bf16.mxu0 %v4576_v40  ;;  %v4624_v40 = vld [vmem:[#allocation4 + $0x224] ss:$16 sps:$4 sm:$0xff]  }
  0xf2   :  { %2895 = vmatpush1.bf16.msra.mxu1 %v4571_v49 }
  0xf3   :  { %2896 = vmatprep.subr.bf16.mxu1 %v4579_v50  ;;  %v1125_v50 = vrot.slane %v1120_v42, %v5276_v13  ;;  %v4688_v42 = vld [vmem:[#allocation4 + $0x380] ss:$16 sps:$4 sm:$0xff]  }
  0xf4   :  { %2725 = vmatpush1.bf16.msra.mxu0 %v4574_v43 }
  0xf5   :  { %2726 = vmatprep.subr.bf16.mxu0 %v4582_v44  ;;  %v4622_v44 = vld [vmem:[#allocation4 + $0x220] ss:$16 sps:$4 sm:$0xff]  }
  0xf6   :  { %2897 = vmatpush1.bf16.msra.mxu1 %v4577_v52 }
  0xf7   :  { %2898 = vmatprep.subr.bf16.mxu1 %v4585_v53  ;;  %v4628_v53 = vld [vmem:[#allocation4 + $0x240] ss:$16 sps:$4 sm:$0xff]  }
  0xf8   :  { %2727 = vmatpush1.bf16.msra.mxu0 %v4580_v47  ;;  %v4630_v47 = vld [vmem:[#allocation4 + $0x244] ss:$16 sps:$4 sm:$0xff]  }
  0xf9   :  { %2728 = vmatprep.subr.bf16.mxu0 %v4588_v48  ;;  %v4633_v48 = vld [vmem:[#allocation4 + $0x24c] ss:$16 sps:$4 sm:$0xff]  }
  0xfa   :  { %2899 = vmatpush1.bf16.msra.mxu1 %v4583_v56  ;;  %v4639_v56 = vld [vmem:[#allocation4 + $0x26c] ss:$16 sps:$4 sm:$0xff]  }
  0xfb   :  { %2900 = vmatprep.subr.bf16.mxu1 %v4591_v57 }
  0xfc   :  { %2729 = vmatpush1.bf16.msra.mxu0 %v4586_v51 }
  0xfd   :  { %2730 = vmatprep.subr.bf16.mxu0 %v4594_v24 }
  0xfe   :  { %2901 = vmatpush1.bf16.msra.mxu1 %v4589_v60  ;;  %v4637_v60 = vld [vmem:[#allocation4 + $0x268] ss:$16 sps:$4 sm:$0xff]  }
  0xff   :  { %2902 = vmatprep.subr.bf16.mxu1 %v4597_v61  ;;  %v4642_v61 = vld [vmem:[#allocation4 + $0x284] ss:$16 sps:$4 sm:$0xff]  }
 0x100   :  { %2731 = vmatpush1.bf16.msra.mxu0 %v4592_v54  ;;  %v4631_v54 = vld [vmem:[#allocation4 + $0x248] ss:$16 sps:$4 sm:$0xff]  }
 0x101   :  { %2732 = vmatprep.subr.bf16.mxu0 %v4600_v55  ;;  %v4636_v55 = vld [vmem:[#allocation4 + $0x264] ss:$16 sps:$4 sm:$0xff]  }
 0x102   :  { %2903 = vmatpush1.bf16.msra.mxu1 %v4595_v0  ;;  %v4643_v0 = vld [vmem:[#allocation4 + $0x288] ss:$16 sps:$4 sm:$0xff]  }
 0x103   :  { %2904 = vmatprep.subr.bf16.mxu1 %v4603_v1  ;;  %v4648_v1 = vld [vmem:[#allocation4 + $0x2a4] ss:$16 sps:$4 sm:$0xff]  }
 0x104   :  { %2733 = vmatpush1.bf16.msra.mxu0 %v4598_v58 }
 0x105   :  { %2734 = vmatprep.subr.bf16.mxu0 %v4606_v59  ;;  %v4634_v59 = vld [vmem:[#allocation4 + $0x260] ss:$16 sps:$4 sm:$0xff]  }
 0x106   :  { %2905 = vmatpush1.bf16.msra.mxu1 %v4601_v5  ;;  %v4649_v5 = vld [vmem:[#allocation4 + $0x2a8] ss:$16 sps:$4 sm:$0xff]  }
 0x107   :  { %2906 = vmatprep.subr.bf16.mxu1 %v4609_v6  ;;  %v4654_v6 = vld [vmem:[#allocation4 + $0x2c4] ss:$16 sps:$4 sm:$0xff]  }
 0x108   :  { %2735 = vmatpush1.bf16.msra.mxu0 %v4604_v62  ;;  %v4645_v62 = vld [vmem:[#allocation4 + $0x28c] ss:$16 sps:$4 sm:$0xff]  }
 0x109   :  { %2736 = vmatprep.subr.bf16.mxu0 %v4612_v63  ;;  %v4640_v63 = vld [vmem:[#allocation4 + $0x280] ss:$16 sps:$4 sm:$0xff]  }
 0x10a   :  { %2907 = vmatpush1.bf16.msra.mxu1 %v4607_v7  ;;  %v4657_v7 = vld [vmem:[#allocation4 + $0x2cc] ss:$16 sps:$4 sm:$0xff]  }
 0x10b   :  { %2908 = vmatprep.subr.bf16.mxu1 %v4615_v8  ;;  %v4652_v8 = vld [vmem:[#allocation4 + $0x2c0] ss:$16 sps:$4 sm:$0xff]  }
 0x10c   :  { %2737 = vmatpush1.bf16.msra.mxu0 %v4610_v2  ;;  %v4651_v2 = vld [vmem:[#allocation4 + $0x2ac] ss:$16 sps:$4 sm:$0xff]  }
 0x10d   :  { %2749 = vmatprep.subr.bf16.mxu0 %v4618_v3  ;;  %v4646_v3 = vld [vmem:[#allocation4 + $0x2a0] ss:$16 sps:$4 sm:$0xff]  }
 0x10e   :  { %2909 = vmatpush1.bf16.msra.mxu1 %v4613_v9  ;;  %v4655_v9 = vld [vmem:[#allocation4 + $0x2c8] ss:$16 sps:$4 sm:$0xff]  }
 0x10f   :  { %2921 = vmatprep.subr.bf16.mxu1 %v4621_v10  ;;  %v4660_v10 = vld [vmem:[#allocation4 + $0x2e4] ss:$16 sps:$4 sm:$0xff]  }
 0x162   :  { %v902_v23 = vpop.f32.mrb[0].mxu0 }
 0x163   :  { %v904_v25 = vpop.f32.mrb[1].mxu0 }
 0x164   :  { %v906_v28 = vpop.f32.mrb[2].mxu0  ;;  %v5298_v43 = vpop.f32.mrb[0].mxu1 }
 0x165   :  { %v1040_v30 = vpack.c.bf16 %v906_v28, %v902_v23  ;;  %v908_v31 = vpop.f32.mrb[3].mxu0  ;;  %v947_v46 = vpop.f32.mrb[1].mxu1  ;;  %v4672_v23 = vld [vmem:[#allocation4 + $0x324] ss:$16 sps:$4 sm:$0xff]  }
 0x166   :  { %v1041_v32 = vpack.c.bf16 %v908_v31, %v904_v25  ;;  %v5300_v49 = vpop.f32.mrb[2].mxu1  ;;  %v4675_v25 = vld [vmem:[#allocation4 + $0x32c] ss:$16 sps:$4 sm:$0xff]   ;;  %v4678_v28 = vld [vmem:[#allocation4 + $0x344] ss:$16 sps:$4 sm:$0xff]  }
 0x167   :  { %v1154_v4 = vadd.bf16 %v1104_v26, %v1040_v30  ;;  %v1042_v51 = vpack.c.bf16 %v5300_v49, %v5298_v43  ;;  %v951_v24 = vpop.f32.mrb[3].mxu1  ;;  %v4670_v26 = vld [vmem:[#allocation4 + $0x320] ss:$16 sps:$4 sm:$0xff]   ;;  %v4679_v31 = vld [vmem:[#allocation4 + $0x348] ss:$16 sps:$4 sm:$0xff]  }
 0x168   :  { %v1155_v34 = vadd.bf16 %v1111_v29, %v1041_v32  ;;  %v1043_v52 = vpack.c.bf16 %v951_v24, %v947_v46  ;;  %v4681_v29 = vld [vmem:[#allocation4 + $0x34c] ss:$16 sps:$4 sm:$0xff]   ;;  %v4676_v30 = vld [vmem:[#allocation4 + $0x340] ss:$16 sps:$4 sm:$0xff]   ;;  %v4684_v32 = vld [vmem:[#allocation4 + $0x364] ss:$16 sps:$4 sm:$0xff]  }
 0x169   :  { %v1162_v39 = vmax.bf16 %v5138_v35, %v1154_v4  ;;  %v4687_v4 = vld [vmem:[#allocation4 + $0x36c] ss:$16 sps:$4 sm:$0xff]   ;;  %v4697_v24 = vld [vmem:[#allocation4 + $0x3a8] ss:$16 sps:$4 sm:$0xff]   ;;  %v4718_v49 = vld [vmem:[#allocation4 + $0x420] ss:$16 sps:$4 sm:$0xff]  }
 0x16a   :  { %v1163_v36 = vmax.bf16 %v5138_v35, %v1155_v34  ;;  %v1157_v57 = vadd.bf16 %v1125_v50, %v1043_v52  ;;  %v1072_v34 = vsub.s32 5, %v5273_v12  ;;  %v4699_v46 = vld [vmem:[#allocation4 + $0x3ac] ss:$16 sps:$4 sm:$0xff]   ;;  %v4694_v50 = vld [vmem:[#allocation4 + $0x3a0] ss:$16 sps:$4 sm:$0xff]  }
 0x16c   :  { %2738 = vmatprep.mubr.bf16.mxu0 %v1163_v36  ;;  %2910 = vmatprep.mubr.bf16.mxu1 %v1163_v36  ;;  %v1165_v58 = vmax.bf16 %v5138_v35, %v1157_v57  ;;  %v4682_v36 = vld [vmem:[#allocation4 + $0x360] ss:$16 sps:$4 sm:$0xff]   ;;  %v4703_v57 = vld [vmem:[#allocation4 + $0x3c8] ss:$16 sps:$4 sm:$0xff]  }
 0x16d   :  { %2739 = vmatmul.mubr.bf16.vlgmr.msra.gmra.mrb[8].mxu0 %v1162_v39  ;;  %2911 = vmatmul.mubr.bf16.vlgmr.msra.gmra.mrb[8].mxu1 %v1162_v39  ;;  %v4693_v39 = vld [vmem:[#allocation4 + $0x38c] ss:$16 sps:$4 sm:$0xff]  }
 0x16e   :  { %2750 = vmatpush1.bf16.msra.mxu0 %v4616_v37  ;;  %2922 = vmatpush1.bf16.msra.mxu1 %v4619_v38  ;;  %v4685_v37 = vld [vmem:[#allocation4 + $0x368] ss:$16 sps:$4 sm:$0xff]   ;;  %v4690_v38 = vld [vmem:[#allocation4 + $0x384] ss:$16 sps:$4 sm:$0xff]  }
 0x16f   :  { %2751 = vmatprep.subr.bf16.mxu0 %v4624_v40  ;;  %2923 = vmatprep.subr.bf16.mxu1 %v4627_v41  ;;  %v1061_v40 = vrot.slane %v5281_v14, %v1060_v33  ;;  %v1073_v41 = vrot.slane %v5281_v14, %v1072_v34  ;;  %v4730_v34 = vld [vmem:[#allocation4 + $0x460] ss:$16 sps:$4 sm:$0xff]  }
 0x170   :  { %2781 = vmatprep.mubr.bf16.mxu0 %v1165_v58  ;;  %2953 = vmatprep.mubr.bf16.mxu1 %v1165_v58 }
 0x172   :  { %2752 = vmatpush1.bf16.msra.mxu0 %v4622_v44  ;;  %2924 = vmatpush1.bf16.msra.mxu1 %v4625_v45  ;;  %v4691_v44 = vld [vmem:[#allocation4 + $0x388] ss:$16 sps:$4 sm:$0xff]   ;;  %v4696_v45 = vld [vmem:[#allocation4 + $0x3a4] ss:$16 sps:$4 sm:$0xff]  }
 0x173   :  { %2753 = vmatprep.subr.bf16.mxu0 %v4630_v47  ;;  %2925 = vmatprep.subr.bf16.mxu1 %v4633_v48  ;;  %v1092_v47 = vpack.c.bf16 %v1061_v40, %v1061_v40  ;;  %v1095_v48 = vpack.c.bf16 %v1073_v41, %v1073_v41  ;;  %v4739_v40 = vld [vmem:[#allocation4 + $0x488] ss:$16 sps:$4 sm:$0xff]   ;;  %v4744_v41 = vld [vmem:[#allocation4 + $0x4a4] ss:$16 sps:$4 sm:$0xff]  }
 0x175   :  { %v1113_v52 = vpack.i.b16 %v1092_v47, %v1092_v47  ;;  %v4753_v47 = vld [vmem:[#allocation4 + $0x4cc] ss:$16 sps:$4 sm:$0xff]  }
 0x176   :  { %2754 = vmatpush1.bf16.msra.mxu0 %v4628_v53  ;;  %2926 = vmatpush1.bf16.msra.mxu1 %v4631_v54  ;;  %v4702_v53 = vld [vmem:[#allocation4 + $0x3c4] ss:$16 sps:$4 sm:$0xff]   ;;  %v4705_v54 = vld [vmem:[#allocation4 + $0x3cc] ss:$16 sps:$4 sm:$0xff]  }
 0x177   :  { %2755 = vmatprep.subr.bf16.mxu0 %v4636_v55  ;;  %2927 = vmatprep.subr.bf16.mxu1 %v4639_v56  ;;  %v1134_v55 = vpack.i.b16 %v1095_v48, %v1095_v48  ;;  %v4700_v56 = vld [vmem:[#allocation4 + $0x3c0] ss:$16 sps:$4 sm:$0xff]  }
 0x178   :  { %v4748_v48 = vld [vmem:[#allocation4 + $0x4c0] ss:$16 sps:$4 sm:$0xff]  }
 0x17a   :  { %2756 = vmatpush1.bf16.msra.mxu0 %v4634_v59  ;;  %2928 = vmatpush1.bf16.msra.mxu1 %v4637_v60  ;;  %v1118_v59 = vrot.slane %v1113_v52, %v5276_v13  ;;  %v4708_v60 = vld [vmem:[#allocation4 + $0x3e4] ss:$16 sps:$4 sm:$0xff]   ;;  %v4759_v52 = vld [vmem:[#allocation4 + $0x4ec] ss:$16 sps:$4 sm:$0xff]  }
 0x17b   :  { %2757 = vmatprep.subr.bf16.mxu0 %v4642_v61  ;;  %2929 = vmatprep.subr.bf16.mxu1 %v4645_v62  ;;  %v4711_v61 = vld [vmem:[#allocation4 + $0x3ec] ss:$16 sps:$4 sm:$0xff]  }
 0x17e   :  { %2758 = vmatpush1.bf16.msra.mxu0 %v4640_v63  ;;  %2930 = vmatpush1.bf16.msra.mxu1 %v4643_v0  ;;  %v1139_v0 = vrot.slane %v1134_v55, %v5276_v13  ;;  %v4762_v55 = vld [vmem:[#allocation4 + $0x504] ss:$16 sps:$4 sm:$0xff]  }
 0x17f   :  { %2759 = vmatprep.subr.bf16.mxu0 %v4648_v1  ;;  %2931 = vmatprep.subr.bf16.mxu1 %v4651_v2 }
 0x182   :  { %2760 = vmatpush1.bf16.msra.mxu0 %v4646_v3  ;;  %2932 = vmatpush1.bf16.msra.mxu1 %v4649_v5  ;;  %v4706_v3 = vld [vmem:[#allocation4 + $0x3e0] ss:$16 sps:$4 sm:$0xff]   ;;  %v4709_v5 = vld [vmem:[#allocation4 + $0x3e8] ss:$16 sps:$4 sm:$0xff]  }
 0x183   :  { %2761 = vmatprep.subr.bf16.mxu0 %v4654_v6  ;;  %2933 = vmatprep.subr.bf16.mxu1 %v4657_v7  ;;  %v1156_v7 = vadd.bf16 %v1118_v59, %v1042_v51  ;;  %v4721_v51 = vld [vmem:[#allocation4 + $0x428] ss:$16 sps:$4 sm:$0xff]  }
 0x184   :  { %v4763_v59 = vld [vmem:[#allocation4 + $0x508] ss:$16 sps:$4 sm:$0xff]  }
 0x186   :  { %2762 = vmatpush1.bf16.msra.mxu0 %v4652_v8  ;;  %2934 = vmatpush1.bf16.msra.mxu1 %v4655_v9  ;;  %v4714_v8 = vld [vmem:[#allocation4 + $0x404] ss:$16 sps:$4 sm:$0xff]   ;;  %v4717_v9 = vld [vmem:[#allocation4 + $0x40c] ss:$16 sps:$4 sm:$0xff]  }
 0x187   :  { %2763 = vmatprep.subr.bf16.mxu0 %v4660_v10  ;;  %2935 = vmatprep.subr.bf16.mxu1 %v4663_v11  ;;  %v4712_v11 = vld [vmem:[#allocation4 + $0x400] ss:$16 sps:$4 sm:$0xff]  }
 0x18a   :  { %2764 = vmatpush1.bf16.msra.mxu0 %v4658_v16  ;;  %2936 = vmatpush1.bf16.msra.mxu1 %v4661_v17  ;;  %v4715_v16 = vld [vmem:[#allocation4 + $0x408] ss:$16 sps:$4 sm:$0xff]   ;;  %v1164_v17 = vmax.bf16 %v5138_v35, %v1156_v7  ;;  %v4780_v7 = vld [vmem:[#allocation4 + $0x564] ss:$16 sps:$4 sm:$0xff]  }
 0x18b   :  { %2765 = vmatprep.subr.bf16.mxu0 %v4666_v18  ;;  %2937 = vmatprep.subr.bf16.mxu1 %v4669_v19  ;;  %v4720_v18 = vld [vmem:[#allocation4 + $0x424] ss:$16 sps:$4 sm:$0xff]   ;;  %v4723_v19 = vld [vmem:[#allocation4 + $0x42c] ss:$16 sps:$4 sm:$0xff]  }
 0x18e   :  { %2766 = vmatpush1.bf16.msra.mxu0 %v4664_v20  ;;  %2938 = vmatpush1.bf16.msra.mxu1 %v4667_v22 }
 0x18f   :  { %2767 = vmatprep.subr.bf16.mxu0 %v4672_v23  ;;  %2939 = vmatprep.subr.bf16.mxu1 %v4675_v25  ;;  %v4726_v23 = vld [vmem:[#allocation4 + $0x444] ss:$16 sps:$4 sm:$0xff]   ;;  %v4729_v25 = vld [vmem:[#allocation4 + $0x44c] ss:$16 sps:$4 sm:$0xff]  }
 0x192   :  { %2768 = vmatpush1.bf16.msra.mxu0 %v4670_v26  ;;  %2940 = vmatpush1.bf16.msra.mxu1 %v4673_v27 }
 0x193   :  { %2769 = vmatprep.subr.bf16.mxu0 %v4678_v28  ;;  %2941 = vmatprep.subr.bf16.mxu1 %v4681_v29 }
 0x196   :  { %2770 = vmatpush1.bf16.msra.mxu0 %v4676_v30  ;;  %2942 = vmatpush1.bf16.msra.mxu1 %v4679_v31  ;;  %v4724_v30 = vld [vmem:[#allocation4 + $0x440] ss:$16 sps:$4 sm:$0xff]   ;;  %v4727_v31 = vld [vmem:[#allocation4 + $0x448] ss:$16 sps:$4 sm:$0xff]  }
 0x197   :  { %2771 = vmatprep.subr.bf16.mxu0 %v4684_v32  ;;  %2943 = vmatprep.subr.bf16.mxu1 %v4687_v4  ;;  %v4732_v32 = vld [vmem:[#allocation4 + $0x464] ss:$16 sps:$4 sm:$0xff]   ;;  %v4735_v4 = vld [vmem:[#allocation4 + $0x46c] ss:$16 sps:$4 sm:$0xff]  }
 0x19a   :  { %2772 = vmatpush1.bf16.msra.mxu0 %v4682_v36  ;;  %2944 = vmatpush1.bf16.msra.mxu1 %v4685_v37  ;;  %v4733_v36 = vld [vmem:[#allocation4 + $0x468] ss:$16 sps:$4 sm:$0xff]   ;;  %v4738_v37 = vld [vmem:[#allocation4 + $0x484] ss:$16 sps:$4 sm:$0xff]  }
 0x19b   :  { %2773 = vmatprep.subr.bf16.mxu0 %v4690_v38  ;;  %2945 = vmatprep.subr.bf16.mxu1 %v4693_v39  ;;  %v4741_v38 = vld [vmem:[#allocation4 + $0x48c] ss:$16 sps:$4 sm:$0xff]   ;;  %v4736_v39 = vld [vmem:[#allocation4 + $0x480] ss:$16 sps:$4 sm:$0xff]  }
 0x19e   :  { %2774 = vmatpush1.bf16.msra.mxu0 %v4688_v42  ;;  %2946 = vmatpush1.bf16.msra.mxu1 %v4691_v44  ;;  %v4747_v42 = vld [vmem:[#allocation4 + $0x4ac] ss:$16 sps:$4 sm:$0xff]   ;;  %v4742_v44 = vld [vmem:[#allocation4 + $0x4a0] ss:$16 sps:$4 sm:$0xff]  }
 0x19f   :  { %2775 = vmatprep.subr.bf16.mxu0 %v4696_v45  ;;  %2947 = vmatprep.subr.bf16.mxu1 %v4699_v46  ;;  %v4745_v45 = vld [vmem:[#allocation4 + $0x4a8] ss:$16 sps:$4 sm:$0xff]   ;;  %v4750_v46 = vld [vmem:[#allocation4 + $0x4c4] ss:$16 sps:$4 sm:$0xff]  }
 0x1a2   :  { %2776 = vmatpush1.bf16.msra.mxu0 %v4694_v50  ;;  %2948 = vmatpush1.bf16.msra.mxu1 %v4697_v24  ;;  %v5312_v58 = vpop.f32.mrb[4].mxu0  ;;  %v4751_v50 = vld [vmem:[#allocation4 + $0x4c8] ss:$16 sps:$4 sm:$0xff]   ;;  %v4756_v24 = vld [vmem:[#allocation4 + $0x4e4] ss:$16 sps:$4 sm:$0xff]  }
 0x1a3   :  { %2777 = vmatprep.subr.bf16.mxu0 %v4702_v53  ;;  %2949 = vmatprep.subr.bf16.mxu1 %v4705_v54  ;;  %v990_v62 = vpop.f32.mrb[5].mxu0  ;;  %v4754_v53 = vld [vmem:[#allocation4 + $0x4e0] ss:$16 sps:$4 sm:$0xff]   ;;  %v4757_v54 = vld [vmem:[#allocation4 + $0x4e8] ss:$16 sps:$4 sm:$0xff]  }
 0x1a4   :  { %v5315_v63 = vpop.f32.mrb[6].mxu0  ;;  %v5325_v43 = vpop.f32.mrb[4].mxu1 }
 0x1a5   :  { %v1044_v1 = vpack.c.bf16 %v5315_v63, %v5312_v58  ;;  %v994_v2 = vpop.f32.mrb[7].mxu0  ;;  %v5327_v22 = vpop.f32.mrb[5].mxu1  ;;  %v4814_v63 = vld [vmem:[#allocation4 + $0x620] ss:$16 sps:$4 sm:$0xff]  }
 0x1a6   :  { %2778 = vmatpush1.bf16.msra.mxu0 %v4700_v56  ;;  %2950 = vmatpush1.bf16.msra.mxu1 %v4703_v57  ;;  %v1045_v6 = vpack.c.bf16 %v994_v2, %v990_v62  ;;  %v5329_v26 = vpop.f32.mrb[6].mxu1  ;;  %v4765_v56 = vld [vmem:[#allocation4 + $0x50c] ss:$16 sps:$4 sm:$0xff]   ;;  %v4760_v57 = vld [vmem:[#allocation4 + $0x500] ss:$16 sps:$4 sm:$0xff]  }
 0x1a7   :  { %2779 = vmatprep.subr.bf16.mxu0 %v4708_v60  ;;  %2951 = vmatprep.subr.bf16.mxu1 %v4711_v61  ;;  %v1046_v27 = vpack.c.bf16 %v5329_v26, %v5325_v43  ;;  %v5333_v28 = vpop.f32.mrb[7].mxu1  ;;  %v4768_v60 = vld [vmem:[#allocation4 + $0x524] ss:$16 sps:$4 sm:$0xff]   ;;  %v4771_v61 = vld [vmem:[#allocation4 + $0x52c] ss:$16 sps:$4 sm:$0xff]  }
 0x1a8   :  { %v1159_v10 = vadd.bf16 %v1139_v0, %v1045_v6  ;;  %v1047_v29 = vpack.c.bf16 %v5333_v28, %v5327_v22  ;;  %v4766_v62 = vld [vmem:[#allocation4 + $0x520] ss:$16 sps:$4 sm:$0xff]   ;;  %v4769_v0 = vld [vmem:[#allocation4 + $0x528] ss:$16 sps:$4 sm:$0xff]   ;;  %v4774_v2 = vld [vmem:[#allocation4 + $0x544] ss:$16 sps:$4 sm:$0xff]  }
 0x1a9   :  { %v4775_v6 = vld [vmem:[#allocation4 + $0x548] ss:$16 sps:$4 sm:$0xff]   ;;  %v4822_v22 = vld [vmem:[#allocation4 + $0x644] ss:$16 sps:$4 sm:$0xff]   ;;  %v4825_v28 = vld [vmem:[#allocation4 + $0x64c] ss:$16 sps:$4 sm:$0xff]  }
 0x1aa   :  { %2780 = vmatpush1.bf16.msra.mxu0 %v4706_v3  ;;  %2952 = vmatpush1.bf16.msra.mxu1 %v4709_v5  ;;  %v1167_v20 = vmax.bf16 %v5138_v35, %v1159_v10  ;;  %v4777_v3 = vld [vmem:[#allocation4 + $0x54c] ss:$16 sps:$4 sm:$0xff]   ;;  %v4772_v5 = vld [vmem:[#allocation4 + $0x540] ss:$16 sps:$4 sm:$0xff]   ;;  %v1080_v10 = vsub.s32 7, %v5273_v12 }
 0x1ab   :  { %2792 = vmatprep.subr.bf16.mxu0 %v4714_v8  ;;  %2964 = vmatprep.subr.bf16.mxu1 %v4717_v9  ;;  %v4783_v8 = vld [vmem:[#allocation4 + $0x56c] ss:$16 sps:$4 sm:$0xff]   ;;  %v1068_v9 = vsub.s32 4, %v5273_v12  ;;  %v4913_v26 = vld [vmem:[#allocation6 + $0x30] ss:$8 sps:$4 sm:$0xff]  }
 0x1ac   :  { %v4915_v43 = vld [vmem:[#allocation6 + $0x34] ss:$8 sps:$4 sm:$0xff]  }
 0x1ad   :  { %2782 = vmatmul.mubr.bf16.vlgmr.msra.gmra.mrb[8].mxu0 %v1164_v17  ;;  %2954 = vmatmul.mubr.bf16.vlgmr.msra.gmra.mrb[8].mxu1 %v1164_v17  ;;  %v4786_v17 = vld [vmem:[#allocation4 + $0x584] ss:$16 sps:$4 sm:$0xff]  }
 0x1ae   :  { %2793 = vmatpush1.bf16.msra.mxu0 %v4712_v11  ;;  %2965 = vmatpush1.bf16.msra.mxu1 %v4715_v16  ;;  %v4778_v11 = vld [vmem:[#allocation4 + $0x560] ss:$16 sps:$4 sm:$0xff]   ;;  %v4781_v16 = vld [vmem:[#allocation4 + $0x568] ss:$16 sps:$4 sm:$0xff]  }
 0x1af   :  { %2794 = vmatprep.subr.bf16.mxu0 %v4720_v18  ;;  %2966 = vmatprep.subr.bf16.mxu1 %v4723_v19  ;;  %v4789_v18 = vld [vmem:[#allocation4 + $0x58c] ss:$16 sps:$4 sm:$0xff]   ;;  %v1069_v19 = vrot.slane %v5281_v14, %v1068_v9  ;;  %v4838_v9 = vld [vmem:[#allocation4 + $0x6a0] ss:$16 sps:$4 sm:$0xff]  }
 0x1b0   :  { %2824 = vmatprep.mubr.bf16.mxu0 %v1167_v20  ;;  %2996 = vmatprep.mubr.bf16.mxu1 %v1167_v20  ;;  %v1081_v20 = vrot.slane %v5281_v14, %v1080_v10  ;;  %v4841_v10 = vld [vmem:[#allocation4 + $0x6a8] ss:$16 sps:$4 sm:$0xff]  }
 0x1b2   :  { %2795 = vmatpush1.bf16.msra.mxu0 %v4718_v49  ;;  %2967 = vmatpush1.bf16.msra.mxu1 %v4721_v51  ;;  %v4784_v49 = vld [vmem:[#allocation4 + $0x580] ss:$16 sps:$4 sm:$0xff]   ;;  %v4787_v51 = vld [vmem:[#allocation4 + $0x588] ss:$16 sps:$4 sm:$0xff]  }
 0x1b3   :  { %2796 = vmatprep.subr.bf16.mxu0 %v4726_v23  ;;  %2968 = vmatprep.subr.bf16.mxu1 %v4729_v25  ;;  %v4792_v23 = vld [vmem:[#allocation4 + $0x5a4] ss:$16 sps:$4 sm:$0xff]   ;;  %v4795_v25 = vld [vmem:[#allocation4 + $0x5ac] ss:$16 sps:$4 sm:$0xff]  }
 0x1b6   :  { %2797 = vmatpush1.bf16.msra.mxu0 %v4724_v30  ;;  %2969 = vmatpush1.bf16.msra.mxu1 %v4727_v31  ;;  %v1094_v30 = vpack.c.bf16 %v1069_v19, %v1069_v19  ;;  %v1097_v31 = vpack.c.bf16 %v1081_v20, %v1081_v20  ;;  %v4852_v19 = vld [vmem:[#allocation4 + $0x6e4] ss:$16 sps:$4 sm:$0xff]   ;;  %v4855_v20 = vld [vmem:[#allocation4 + $0x6ec] ss:$16 sps:$4 sm:$0xff]  }
 0x1b7   :  { %2798 = vmatprep.subr.bf16.mxu0 %v4732_v32  ;;  %2970 = vmatprep.subr.bf16.mxu1 %v4735_v4  ;;  %v4790_v32 = vld [vmem:[#allocation4 + $0x5a0] ss:$16 sps:$4 sm:$0xff]   ;;  %v4793_v4 = vld [vmem:[#allocation4 + $0x5a8] ss:$16 sps:$4 sm:$0xff]  }
 0x1ba   :  { %2799 = vmatpush1.bf16.msra.mxu0 %v4730_v34  ;;  %2971 = vmatpush1.bf16.msra.mxu1 %v4733_v36  ;;  %v1127_v34 = vpack.i.b16 %v1094_v30, %v1094_v30  ;;  %v4798_v36 = vld [vmem:[#allocation4 + $0x5c4] ss:$16 sps:$4 sm:$0xff]   ;;  %v4856_v30 = vld [vmem:[#allocation4 + $0x700] ss:$16 sps:$4 sm:$0xff]  }
 0x1bb   :  { %2800 = vmatprep.subr.bf16.mxu0 %v4738_v37  ;;  %2972 = vmatprep.subr.bf16.mxu1 %v4741_v38  ;;  %v4801_v37 = vld [vmem:[#allocation4 + $0x5cc] ss:$16 sps:$4 sm:$0xff]   ;;  %v1148_v38 = vpack.i.b16 %v1097_v31, %v1097_v31  ;;  %v4859_v31 = vld [vmem:[#allocation4 + $0x708] ss:$16 sps:$4 sm:$0xff]  }
 0x1be   :  { %2801 = vmatpush1.bf16.msra.mxu0 %v4736_v39  ;;  %2973 = vmatpush1.bf16.msra.mxu1 %v4739_v40  ;;  %v4796_v39 = vld [vmem:[#allocation4 + $0x5c0] ss:$16 sps:$4 sm:$0xff]   ;;  %v4799_v40 = vld [vmem:[#allocation4 + $0x5c8] ss:$16 sps:$4 sm:$0xff]  }
 0x1bf   :  { %2802 = vmatprep.subr.bf16.mxu0 %v4744_v41  ;;  %2974 = vmatprep.subr.bf16.mxu1 %v4747_v42  ;;  %v1132_v41 = vrot.slane %v1127_v34, %v5276_v13  ;;  %v4804_v42 = vld [vmem:[#allocation4 + $0x5e4] ss:$16 sps:$4 sm:$0xff]   ;;  %v4862_v34 = vld [vmem:[#allocation4 + $0x720] ss:$16 sps:$4 sm:$0xff]  }
 0x1c2   :  { %2803 = vmatpush1.bf16.msra.mxu0 %v4742_v44  ;;  %2975 = vmatpush1.bf16.msra.mxu1 %v4745_v45  ;;  %v4807_v44 = vld [vmem:[#allocation4 + $0x5ec] ss:$16 sps:$4 sm:$0xff]   ;;  %v1153_v45 = vrot.slane %v1148_v38, %v5276_v13 }
 0x1c3   :  { %2804 = vmatprep.subr.bf16.mxu0 %v4750_v46  ;;  %2976 = vmatprep.subr.bf16.mxu1 %v4753_v47  ;;  %v4802_v46 = vld [vmem:[#allocation4 + $0x5e0] ss:$16 sps:$4 sm:$0xff]   ;;  %v4805_v47 = vld [vmem:[#allocation4 + $0x5e8] ss:$16 sps:$4 sm:$0xff]   ;;  %v4873_v38 = vld [vmem:[#allocation4 + $0x74c] ss:$16 sps:$4 sm:$0xff]  }
 0x1c6   :  { %2805 = vmatpush1.bf16.msra.mxu0 %v4748_v48  ;;  %2977 = vmatpush1.bf16.msra.mxu1 %v4751_v50  ;;  %v1158_v48 = vadd.bf16 %v1132_v41, %v1044_v1  ;;  %v4810_v50 = vld [vmem:[#allocation4 + $0x604] ss:$16 sps:$4 sm:$0xff]   ;;  %v4817_v1 = vld [vmem:[#allocation4 + $0x628] ss:$16 sps:$4 sm:$0xff]  }
 0x1c7   :  { %2806 = vmatprep.subr.bf16.mxu0 %v4756_v24  ;;  %2978 = vmatprep.subr.bf16.mxu1 %v4759_v52  ;;  %v4813_v24 = vld [vmem:[#allocation4 + $0x60c] ss:$16 sps:$4 sm:$0xff]   ;;  %v1161_v52 = vadd.bf16 %v1153_v45, %v1047_v29  ;;  %v4820_v29 = vld [vmem:[#allocation4 + $0x640] ss:$16 sps:$4 sm:$0xff]   ;;  %v4876_v41 = vld [vmem:[#allocation4 + $0x764] ss:$16 sps:$4 sm:$0xff]  }
 0x1c8   :  { %v4874_v45 = vld [vmem:[#allocation4 + $0x760] ss:$16 sps:$4 sm:$0xff]  }
 0x1c9   :  { %v1169_v58 = vmax.bf16 %v5138_v35, %v1161_v52  ;;  %v4883_v52 = vld [vmem:[#allocation4 + $0x788] ss:$16 sps:$4 sm:$0xff]  }
 0x1ca   :  { %2807 = vmatpush1.bf16.msra.mxu0 %v4754_v53  ;;  %2979 = vmatpush1.bf16.msra.mxu1 %v4757_v54  ;;  %v4808_v53 = vld [vmem:[#allocation4 + $0x600] ss:$16 sps:$4 sm:$0xff]   ;;  %v4811_v54 = vld [vmem:[#allocation4 + $0x608] ss:$16 sps:$4 sm:$0xff]  }
 0x1cb   :  { %2808 = vmatprep.subr.bf16.mxu0 %v4762_v55  ;;  %2980 = vmatprep.subr.bf16.mxu1 %v4765_v56  ;;  %v1166_v55 = vmax.bf16 %v5138_v35, %v1158_v48  ;;  %v4816_v56 = vld [vmem:[#allocation4 + $0x624] ss:$16 sps:$4 sm:$0xff]   ;;  %v4885_v48 = vld [vmem:[#allocation4 + $0x78c] ss:$16 sps:$4 sm:$0xff]  }
 0x1ce   :  { %2809 = vmatpush1.bf16.msra.mxu0 %v4760_v57  ;;  %2981 = vmatpush1.bf16.msra.mxu1 %v4763_v59  ;;  %v4819_v57 = vld [vmem:[#allocation4 + $0x62c] ss:$16 sps:$4 sm:$0xff]   ;;  %v4823_v59 = vld [vmem:[#allocation4 + $0x648] ss:$16 sps:$4 sm:$0xff]  }
 0x1cf   :  { %2810 = vmatprep.subr.bf16.mxu0 %v4768_v60  ;;  %2982 = vmatprep.subr.bf16.mxu1 %v4771_v61  ;;  %v4828_v60 = vld [vmem:[#allocation4 + $0x664] ss:$16 sps:$4 sm:$0xff]   ;;  %v4831_v61 = vld [vmem:[#allocation4 + $0x66c] ss:$16 sps:$4 sm:$0xff]  }
 0x1d2   :  { %2811 = vmatpush1.bf16.msra.mxu0 %v4766_v62  ;;  %2983 = vmatpush1.bf16.msra.mxu1 %v4769_v0  ;;  %v4826_v62 = vld [vmem:[#allocation4 + $0x660] ss:$16 sps:$4 sm:$0xff]   ;;  %v4829_v0 = vld [vmem:[#allocation4 + $0x668] ss:$16 sps:$4 sm:$0xff]  }
 0x1d3   :  { %2812 = vmatprep.subr.bf16.mxu0 %v4774_v2  ;;  %2984 = vmatprep.subr.bf16.mxu1 %v4777_v3  ;;  %v4834_v2 = vld [vmem:[#allocation4 + $0x684] ss:$16 sps:$4 sm:$0xff]   ;;  %v4837_v3 = vld [vmem:[#allocation4 + $0x68c] ss:$16 sps:$4 sm:$0xff]  }
 0x1d6   :  { %2813 = vmatpush1.bf16.msra.mxu0 %v4772_v5  ;;  %2985 = vmatpush1.bf16.msra.mxu1 %v4775_v6  ;;  %v4832_v5 = vld [vmem:[#allocation4 + $0x680] ss:$16 sps:$4 sm:$0xff]   ;;  %v4835_v6 = vld [vmem:[#allocation4 + $0x688] ss:$16 sps:$4 sm:$0xff]  }
 0x1d7   :  { %2814 = vmatprep.subr.bf16.mxu0 %v4780_v7  ;;  %2986 = vmatprep.subr.bf16.mxu1 %v4783_v8  ;;  %v4840_v7 = vld [vmem:[#allocation4 + $0x6a4] ss:$16 sps:$4 sm:$0xff]   ;;  %v4843_v8 = vld [vmem:[#allocation4 + $0x6ac] ss:$16 sps:$4 sm:$0xff]  }
 0x1da   :  { %2815 = vmatpush1.bf16.msra.mxu0 %v4778_v11  ;;  %2987 = vmatpush1.bf16.msra.mxu1 %v4781_v16  ;;  %v4846_v11 = vld [vmem:[#allocation4 + $0x6c4] ss:$16 sps:$4 sm:$0xff]   ;;  %v4849_v16 = vld [vmem:[#allocation4 + $0x6cc] ss:$16 sps:$4 sm:$0xff]  }
 0x1db   :  { %2816 = vmatprep.subr.bf16.mxu0 %v4786_v17  ;;  %2988 = vmatprep.subr.bf16.mxu1 %v4789_v18  ;;  %v4844_v17 = vld [vmem:[#allocation4 + $0x6c0] ss:$16 sps:$4 sm:$0xff]   ;;  %v4847_v18 = vld [vmem:[#allocation4 + $0x6c8] ss:$16 sps:$4 sm:$0xff]  }
 0x1de   :  { %2817 = vmatpush1.bf16.msra.mxu0 %v4784_v49  ;;  %2989 = vmatpush1.bf16.msra.mxu1 %v4787_v51  ;;  %v4850_v49 = vld [vmem:[#allocation4 + $0x6e0] ss:$16 sps:$4 sm:$0xff]   ;;  %v4853_v51 = vld [vmem:[#allocation4 + $0x6e8] ss:$16 sps:$4 sm:$0xff]  }
 0x1df   :  { %2818 = vmatprep.subr.bf16.mxu0 %v4792_v23  ;;  %2990 = vmatprep.subr.bf16.mxu1 %v4795_v25  ;;  %v4858_v23 = vld [vmem:[#allocation4 + $0x704] ss:$16 sps:$4 sm:$0xff]   ;;  %v4861_v25 = vld [vmem:[#allocation4 + $0x70c] ss:$16 sps:$4 sm:$0xff]  }
 0x1e2   :  { %2819 = vmatpush1.bf16.msra.mxu0 %v4790_v32  ;;  %2991 = vmatpush1.bf16.msra.mxu1 %v4793_v4  ;;  %v4864_v32 = vld [vmem:[#allocation4 + $0x724] ss:$16 sps:$4 sm:$0xff]   ;;  %v4867_v4 = vld [vmem:[#allocation4 + $0x72c] ss:$16 sps:$4 sm:$0xff]  }
 0x1e3   :  { %2820 = vmatprep.subr.bf16.mxu0 %v4798_v36  ;;  %2992 = vmatprep.subr.bf16.mxu1 %v4801_v37  ;;  %v4865_v36 = vld [vmem:[#allocation4 + $0x728] ss:$16 sps:$4 sm:$0xff]   ;;  %v4870_v37 = vld [vmem:[#allocation4 + $0x744] ss:$16 sps:$4 sm:$0xff]  }
 0x1e6   :  { %2821 = vmatpush1.bf16.msra.mxu0 %v4796_v39  ;;  %2993 = vmatpush1.bf16.msra.mxu1 %v4799_v40  ;;  %v4868_v39 = vld [vmem:[#allocation4 + $0x740] ss:$16 sps:$4 sm:$0xff]   ;;  %v4871_v40 = vld [vmem:[#allocation4 + $0x748] ss:$16 sps:$4 sm:$0xff]  }
 0x1e7   :  { %2822 = vmatprep.subr.bf16.mxu0 %v4804_v42  ;;  %2994 = vmatprep.subr.bf16.mxu1 %v4807_v44  ;;  %v4879_v42 = vld [vmem:[#allocation4 + $0x76c] ss:$16 sps:$4 sm:$0xff]   ;;  %v1076_v44 = vsub.s32 6, %v5273_v12 }
 0x1ea   :  { %2823 = vmatpush1.bf16.msra.mxu0 %v4802_v46  ;;  %2995 = vmatpush1.bf16.msra.mxu1 %v4805_v47  ;;  %v4877_v46 = vld [vmem:[#allocation4 + $0x768] ss:$16 sps:$4 sm:$0xff]   ;;  %v4882_v47 = vld [vmem:[#allocation4 + $0x784] ss:$16 sps:$4 sm:$0xff]  }
 0x1eb   :  { %2835 = vmatprep.subr.bf16.mxu0 %v4810_v50  ;;  %3007 = vmatprep.subr.bf16.mxu1 %v4813_v24  ;;  %v1077_v50 = vrot.slane %v5281_v14, %v1076_v44  ;;  %v4880_v24 = vld [vmem:[#allocation4 + $0x780] ss:$16 sps:$4 sm:$0xff]  }
 0x1ec   :  { %v4892_v14 = vld [vmem:[#allocation4 + $0x7c0] ss:$16 sps:$4 sm:$0xff]  }
 0x1ed   :  { %2825 = vmatmul.mubr.bf16.vlgmr.msra.gmra.mrb[8].mxu0 %v1166_v55  ;;  %2997 = vmatmul.mubr.bf16.vlgmr.msra.gmra.mrb[8].mxu1 %v1166_v55  ;;  %v4891_v55 = vld [vmem:[#allocation4 + $0x7ac] ss:$16 sps:$4 sm:$0xff]   ;;  %v5000_v44 = vld [vmem:[#allocation7 + $0x40] sm:$0xff]  }
 0x1ee   :  { %2836 = vmatpush1.bf16.msra.mxu0 %v4808_v53  ;;  %3008 = vmatpush1.bf16.msra.mxu1 %v4811_v54  ;;  %v1096_v53 = vpack.c.bf16 %v1077_v50, %v1077_v50  ;;  %v4888_v54 = vld [vmem:[#allocation4 + $0x7a4] ss:$16 sps:$4 sm:$0xff]  }
 0x1ef   :  { %2837 = vmatprep.subr.bf16.mxu0 %v4816_v56  ;;  %3009 = vmatprep.subr.bf16.mxu1 %v4819_v57  ;;  %v4886_v56 = vld [vmem:[#allocation4 + $0x7a0] ss:$16 sps:$4 sm:$0xff]   ;;  %v4889_v57 = vld [vmem:[#allocation4 + $0x7a8] ss:$16 sps:$4 sm:$0xff]  }
 0x1f0   :  { %2867 = vmatprep.mubr.bf16.mxu0 %v1169_v58  ;;  %3039 = vmatprep.mubr.bf16.mxu1 %v1169_v58  ;;  %v1141_v58 = vpack.i.b16 %v1096_v53, %v1096_v53  ;;  %v5005_v50 = vld [vmem:[#allocation7 + $0x10] sm:$0xff]   ;;  %v5008_v53 = vld [vmem:[#allocation7 + $0x60] sm:$0xff]  }
 0x1f2   :  { %2838 = vmatpush1.bf16.msra.mxu0 %v4814_v63  ;;  %3010 = vmatpush1.bf16.msra.mxu1 %v4817_v1  ;;  %v4894_v63 = vld [vmem:[#allocation4 + $0x7c4] ss:$16 sps:$4 sm:$0xff]   ;;  %v4897_v1 = vld [vmem:[#allocation4 + $0x7cc] ss:$16 sps:$4 sm:$0xff]  }
 0x1f3   :  { %2839 = vmatprep.subr.bf16.mxu0 %v4822_v22  ;;  %3011 = vmatprep.subr.bf16.mxu1 %v4825_v28  ;;  %v4895_v22 = vld [vmem:[#allocation4 + $0x7c8] ss:$16 sps:$4 sm:$0xff]   ;;  %v1146_v28 = vrot.slane %v1141_v58, %v5276_v13 }
 0x1f6   :  { %2840 = vmatpush1.bf16.msra.mxu0 %v4820_v29  ;;  %3012 = vmatpush1.bf16.msra.mxu1 %v4823_v59  ;;  %v4900_v29 = vld [vmem:[#allocation4 + $0x7e4] ss:$16 sps:$4 sm:$0xff]   ;;  %v4903_v59 = vld [vmem:[#allocation4 + $0x7ec] ss:$16 sps:$4 sm:$0xff]  }
 0x1f7   :  { %2841 = vmatprep.subr.bf16.mxu0 %v4828_v60  ;;  %3013 = vmatprep.subr.bf16.mxu1 %v4831_v61  ;;  %v4898_v60 = vld [vmem:[#allocation4 + $0x7e0] ss:$16 sps:$4 sm:$0xff]   ;;  %v4901_v61 = vld [vmem:[#allocation4 + $0x7e8] ss:$16 sps:$4 sm:$0xff]  }
 0x1fa   :  { %2842 = vmatpush1.bf16.msra.mxu0 %v4826_v62  ;;  %3014 = vmatpush1.bf16.msra.mxu1 %v4829_v0  ;;  %v1160_v62 = vadd.bf16 %v1146_v28, %v1046_v27  ;;  %v4906_v0 = vld [vmem:[#allocation6 + $0x4] ss:$8 sps:$4 sm:$0xff]  }
 0x1fb   :  { %2843 = vmatprep.subr.bf16.mxu0 %v4834_v2  ;;  %3015 = vmatprep.subr.bf16.mxu1 %v4837_v3  ;;  %v4904_v2 = vld [vmem:[#allocation6] ss:$8 sps:$4 sm:$0xff]   ;;  %v4918_v27 = vld [vmem:[#allocation6 + $0x44] ss:$8 sps:$4 sm:$0xff]  }
 0x1fc   :  { %v1168_v3 = vmax.bf16 %v5138_v35, %v1160_v62 }
 0x1fe   :  { %2844 = vmatpush1.bf16.msra.mxu0 %v4832_v5  ;;  %3016 = vmatpush1.bf16.msra.mxu1 %v4835_v6  ;;  %v4909_v5 = vld [vmem:[#allocation6 + $0x14] ss:$8 sps:$4 sm:$0xff]   ;;  %v4907_v6 = vld [vmem:[#allocation6 + $0x10] ss:$8 sps:$4 sm:$0xff]  }
 0x1ff   :  { %2845 = vmatprep.subr.bf16.mxu0 %v4840_v7  ;;  %3017 = vmatprep.subr.bf16.mxu1 %v4843_v8  ;;  %v4912_v7 = vld [vmem:[#allocation6 + $0x24] ss:$8 sps:$4 sm:$0xff]   ;;  %v4910_v8 = vld [vmem:[#allocation6 + $0x20] ss:$8 sps:$4 sm:$0xff]  }
 0x202   :  { %2846 = vmatpush1.bf16.msra.mxu0 %v4838_v9  ;;  %3018 = vmatpush1.bf16.msra.mxu1 %v4841_v10  ;;  %v4916_v9 = vld [vmem:[#allocation6 + $0x40] ss:$8 sps:$4 sm:$0xff]   ;;  %v4921_v10 = vld [vmem:[#allocation6 + $0x54] ss:$8 sps:$4 sm:$0xff]  }
 0x203   :  { %2847 = vmatprep.subr.bf16.mxu0 %v4846_v11  ;;  %3019 = vmatprep.subr.bf16.mxu1 %v4849_v16  ;;  %v4919_v11 = vld [vmem:[#allocation6 + $0x50] ss:$8 sps:$4 sm:$0xff]   ;;  %v4924_v16 = vld [vmem:[#allocation6 + $0x64] ss:$8 sps:$4 sm:$0xff]  }
 0x206   :  { %2848 = vmatpush1.bf16.msra.mxu0 %v4844_v17  ;;  %3020 = vmatpush1.bf16.msra.mxu1 %v4847_v18  ;;  %v4922_v17 = vld [vmem:[#allocation6 + $0x60] ss:$8 sps:$4 sm:$0xff]   ;;  %v4927_v18 = vld [vmem:[#allocation6 + $0x74] ss:$8 sps:$4 sm:$0xff]  }
 0x207   :  { %2849 = vmatprep.subr.bf16.mxu0 %v4852_v19  ;;  %3021 = vmatprep.subr.bf16.mxu1 %v4855_v20  ;;  %v4925_v19 = vld [vmem:[#allocation6 + $0x70] ss:$8 sps:$4 sm:$0xff]   ;;  %v4930_v20 = vld [vmem:[#allocation6 + $0x84] ss:$8 sps:$4 sm:$0xff]  }
 0x20a   :  { %2850 = vmatpush1.bf16.msra.mxu0 %v4850_v49  ;;  %3022 = vmatpush1.bf16.msra.mxu1 %v4853_v51  ;;  %v4928_v49 = vld [vmem:[#allocation6 + $0x80] ss:$8 sps:$4 sm:$0xff]   ;;  %v4933_v51 = vld [vmem:[#allocation6 + $0x94] ss:$8 sps:$4 sm:$0xff]  }
 0x20b   :  { %2851 = vmatprep.subr.bf16.mxu0 %v4858_v23  ;;  %3023 = vmatprep.subr.bf16.mxu1 %v4861_v25  ;;  %v4931_v23 = vld [vmem:[#allocation6 + $0x90] ss:$8 sps:$4 sm:$0xff]   ;;  %v4936_v25 = vld [vmem:[#allocation6 + $0xa4] ss:$8 sps:$4 sm:$0xff]  }
 0x20e   :  { %2852 = vmatpush1.bf16.msra.mxu0 %v4856_v30  ;;  %3024 = vmatpush1.bf16.msra.mxu1 %v4859_v31  ;;  %v4934_v30 = vld [vmem:[#allocation6 + $0xa0] ss:$8 sps:$4 sm:$0xff]   ;;  %v4939_v31 = vld [vmem:[#allocation6 + $0xb4] ss:$8 sps:$4 sm:$0xff]  }
 0x20f   :  { %2853 = vmatprep.subr.bf16.mxu0 %v4864_v32  ;;  %3025 = vmatprep.subr.bf16.mxu1 %v4867_v4  ;;  %v4937_v32 = vld [vmem:[#allocation6 + $0xb0] ss:$8 sps:$4 sm:$0xff]   ;;  %v4942_v4 = vld [vmem:[#allocation6 + $0xc4] ss:$8 sps:$4 sm:$0xff]  }
 0x212   :  { %2854 = vmatpush1.bf16.msra.mxu0 %v4862_v34  ;;  %3026 = vmatpush1.bf16.msra.mxu1 %v4865_v36  ;;  %v4940_v34 = vld [vmem:[#allocation6 + $0xc0] ss:$8 sps:$4 sm:$0xff]   ;;  %v4945_v36 = vld [vmem:[#allocation6 + $0xd4] ss:$8 sps:$4 sm:$0xff]  }
 0x213   :  { %2855 = vmatprep.subr.bf16.mxu0 %v4870_v37  ;;  %3027 = vmatprep.subr.bf16.mxu1 %v4873_v38  ;;  %v4943_v37 = vld [vmem:[#allocation6 + $0xd0] ss:$8 sps:$4 sm:$0xff]   ;;  %v4948_v38 = vld [vmem:[#allocation6 + $0xe4] ss:$8 sps:$4 sm:$0xff]  }
 0x216   :  { %2856 = vmatpush1.bf16.msra.mxu0 %v4868_v39  ;;  %3028 = vmatpush1.bf16.msra.mxu1 %v4871_v40  ;;  %v4946_v39 = vld [vmem:[#allocation6 + $0xe0] ss:$8 sps:$4 sm:$0xff]   ;;  %v4951_v40 = vld [vmem:[#allocation6 + $0xf4] ss:$8 sps:$4 sm:$0xff]  }
 0x217   :  { %2857 = vmatprep.subr.bf16.mxu0 %v4876_v41  ;;  %3029 = vmatprep.subr.bf16.mxu1 %v4879_v42  ;;  %v4949_v41 = vld [vmem:[#allocation6 + $0xf0] ss:$8 sps:$4 sm:$0xff]   ;;  %v4954_v42 = vld [vmem:[#allocation6 + $0x104] ss:$8 sps:$4 sm:$0xff]  }
 0x21a   :  { %2858 = vmatpush1.bf16.msra.mxu0 %v4874_v45  ;;  %3030 = vmatpush1.bf16.msra.mxu1 %v4877_v46  ;;  %v5001_v45 = vld [vmem:[#allocation7] sm:$0xff]   ;;  %v5002_v46 = vld [vmem:[#allocation7 + $0x48] sm:$0xff]  }
 0x21b   :  { %2859 = vmatprep.subr.bf16.mxu0 %v4882_v47  ;;  %3031 = vmatprep.subr.bf16.mxu1 %v4885_v48  ;;  %v5003_v47 = vld [vmem:[#allocation7 + $0x8] sm:$0xff]   ;;  %v5004_v48 = vld [vmem:[#allocation7 + $0x50] sm:$0xff]  }
 0x21e   :  { %2860 = vmatpush1.bf16.msra.mxu0 %v4880_v24  ;;  %3032 = vmatpush1.bf16.msra.mxu1 %v4883_v52  ;;  %v5006_v24 = vld [vmem:[#allocation7 + $0x58] sm:$0xff]  }
 0x21f   :  { %2861 = vmatprep.subr.bf16.mxu0 %v4888_v54  ;;  %3033 = vmatprep.subr.bf16.mxu1 %v4891_v55  ;;  %v5007_v52 = vld [vmem:[#allocation7 + $0x18] sm:$0xff]   ;;  %v5009_v54 = vld [vmem:[#allocation7 + $0x20] sm:$0xff]   ;;  %v5010_v55 = vld [vmem:[#allocation7 + $0x68] sm:$0xff]  }
 0x222   :  { %2862 = vmatpush1.bf16.msra.mxu0 %v4886_v56  ;;  %3034 = vmatpush1.bf16.msra.mxu1 %v4889_v57  ;;  %v3054_v56 = vld [vmem:[%s5426_s4] sm:$0xf] }
 0x223   :  { %2863 = vmatprep.subr.bf16.mxu0 %v4894_v63  ;;  %3035 = vmatprep.subr.bf16.mxu1 %v4897_v1  ;;  %v3059_v57 = vrot.slane %v3054_v56, %v5276_v13  ;;  %v3067_v58 = vrot.slane %v3054_v56, %v1060_v33  ;;  %v3063_v63 = vrot.slane %v3054_v56, %v5284_v15 }
 0x224   :  { %v3071_v1 = vrot.slane %v3054_v56, %v1064_v21  ;;  %v4993_v56 = vld [vmem:[#allocation6 + $0x1d4] ss:$8 sps:$4 sm:$0xff]  }
 0x225   :  { %v3077_v28 = vpack.c.bf16 %v3063_v63, %v3063_v63  ;;  %v4994_v63 = vld [vmem:[#allocation6 + $0x1e0] ss:$8 sps:$4 sm:$0xff]  }
 0x226   :  { %2864 = vmatpush1.bf16.msra.mxu0 %v4892_v14  ;;  %3036 = vmatpush1.bf16.msra.mxu1 %v4895_v22  ;;  %v3076_v14 = vpack.c.bf16 %v3059_v57, %v3059_v57  ;;  %v3078_v22 = vpack.c.bf16 %v3067_v58, %v3067_v58  ;;  %v4991_v57 = vld [vmem:[#allocation6 + $0x1d0] ss:$8 sps:$4 sm:$0xff]   ;;  %v4996_v58 = vld [vmem:[#allocation6 + $0x1e4] ss:$8 sps:$4 sm:$0xff]  }
 0x227   :  { %2865 = vmatprep.subr.bf16.mxu0 %v4900_v29  ;;  %3037 = vmatprep.subr.bf16.mxu1 %v4903_v59  ;;  %v3079_v29 = vpack.c.bf16 %v3071_v1, %v3071_v1  ;;  %v4999_v1 = vld [vmem:[#allocation6 + $0x1f4] ss:$8 sps:$4 sm:$0xff]  }
 0x228   :  { %v3081_v59 = vpack.i.b16 %v3076_v14, %v3076_v14  ;;  %v4997_v14 = vld [vmem:[#allocation6 + $0x1f0] ss:$8 sps:$4 sm:$0xff]  }
 0x229   :  { %v3102_v62 = vpack.i.b16 %v3079_v29, %v3079_v29  ;;  %v5012_v29 = vld [vmem:[#allocation7 + $0x70] sm:$0xff]  }
 0x22a   :  { %2866 = vmatpush1.bf16.msra.mxu0 %v4898_v60  ;;  %3038 = vmatpush1.bf16.msra.mxu1 %v4901_v61  ;;  %v3095_v60 = vpack.i.b16 %v3078_v22, %v3078_v22  ;;  %v3088_v61 = vpack.i.b16 %v3077_v28, %v3077_v28  ;;  %v5011_v28 = vld [vmem:[#allocation7 + $0x28] sm:$0xff]  }
 0x22b   :  { %3500 = vmatprep.subr.bf16.mxu0 %v4906_v0  ;;  %4426 = vmatprep.subr.bf16.mxu1 %v5000_v44  ;;  %v3107_v21 = vrot.slane %v3102_v62, %v5276_v13  ;;  %v4973_v44 = vld [vmem:[#allocation6 + $0x170] ss:$8 sps:$4 sm:$0xff]   ;;  %v5139_v62 = vmov 0.0  }
 0x22c   :  { %v3100_v33 = vrot.slane %v3095_v60, %v5276_v13  ;;  %v3093_v12 = vrot.slane %v3088_v61, %v5276_v13  ;;  %v5014_v60 = vld [vmem:[#allocation7 + $0x78] sm:$0xff]  }
 0x22d   :  { %2868 = vmatmul.mubr.bf16.vlgmr.msra.gmra.mrb[8].mxu0 %v1168_v3  ;;  %3040 = vmatmul.mubr.bf16.vlgmr.msra.gmra.mrb[8].mxu1 %v1168_v3  ;;  %v5015_v61 = vld [vmem:[#allocation7 + $0x38] sm:$0xff]  }
 0x22e   :  { %3501 = vmatpush1.bf16.msra.mxu0 %v4904_v2  ;;  %4427 = vmatpush3.bf16.msra.mxu1 %v5001_v45  ;;  %v4978_v45 = vld [vmem:[#allocation6 + $0x184] ss:$8 sps:$4 sm:$0xff]  }
 0x22f   :  { %3502 = vmatprep.subr.bf16.mxu0 %v4909_v5  ;;  %4428 = vmatprep.subr.bf16.mxu1 %v5002_v46  ;;  %v4976_v46 = vld [vmem:[#allocation6 + $0x180] ss:$8 sps:$4 sm:$0xff]  }
 0x232   :  { %3503 = vmatpush1.bf16.msra.mxu0 %v4907_v6  ;;  %4429 = vmatpush3.bf16.msra.mxu1 %v5003_v47  ;;  %v3086_v6 = vrot.slane %v3081_v59, %v5276_v13  ;;  %v4981_v47 = vld [vmem:[#allocation6 + $0x194] ss:$8 sps:$4 sm:$0xff]  }
 0x233   :  { %3504 = vmatprep.subr.bf16.mxu0 %v4912_v7  ;;  %4430 = vmatprep.subr.bf16.mxu1 %v5004_v48  ;;  %v4979_v48 = vld [vmem:[#allocation6 + $0x190] ss:$8 sps:$4 sm:$0xff]  }
 0x234   :  { %v5013_v59 = vld [vmem:[#allocation7 + $0x30] sm:$0xff]  }
 0x236   :  { %3505 = vmatpush1.bf16.msra.mxu0 %v4910_v8  ;;  %4431 = vmatpush3.bf16.msra.mxu1 %v5005_v50  ;;  %v4984_v50 = vld [vmem:[#allocation6 + $0x1a4] ss:$8 sps:$4 sm:$0xff]  }
 0x237   :  { %3506 = vmatprep.subr.bf16.mxu0 %v4915_v43  ;;  %4432 = vmatprep.subr.bf16.mxu1 %v5006_v24  ;;  %v4982_v24 = vld [vmem:[#allocation6 + $0x1a0] ss:$8 sps:$4 sm:$0xff]  }
 0x23a   :  { %3507 = vmatpush1.bf16.msra.mxu0 %v4913_v26  ;;  %4433 = vmatpush3.bf16.msra.mxu1 %v5007_v52  ;;  %v4987_v52 = vld [vmem:[#allocation6 + $0x1b4] ss:$8 sps:$4 sm:$0xff]  }
 0x23b   :  { %3508 = vmatprep.subr.bf16.mxu0 %v4918_v27  ;;  %4434 = vmatprep.subr.bf16.mxu1 %v5008_v53  ;;  %v4985_v53 = vld [vmem:[#allocation6 + $0x1b0] ss:$8 sps:$4 sm:$0xff]  }
 0x23e   :  { %3509 = vmatpush1.bf16.msra.mxu0 %v4916_v9  ;;  %4435 = vmatpush3.bf16.msra.mxu1 %v5009_v54  ;;  %v4990_v54 = vld [vmem:[#allocation6 + $0x1c4] ss:$8 sps:$4 sm:$0xff]  }
 0x23f   :  { %3510 = vmatprep.subr.bf16.mxu0 %v4921_v10  ;;  %4436 = vmatprep.subr.bf16.mxu1 %v5010_v55  ;;  %v4988_v55 = vld [vmem:[#allocation6 + $0x1c0] ss:$8 sps:$4 sm:$0xff]  }
 0x242   :  { %3511 = vmatpush1.bf16.msra.mxu0 %v4919_v11  ;;  %4437 = vmatpush3.bf16.msra.mxu1 %v5011_v28 }
 0x243   :  { %3512 = vmatprep.subr.bf16.mxu0 %v4924_v16  ;;  %4438 = vmatprep.subr.bf16.mxu1 %v5012_v29 }
 0x246   :  { %3513 = vmatpush1.bf16.msra.mxu0 %v4922_v17  ;;  %4439 = vmatpush3.bf16.msra.mxu1 %v5013_v59 }
 0x247   :  { %3514 = vmatprep.subr.bf16.mxu0 %v4927_v18  ;;  %4440 = vmatprep.subr.bf16.mxu1 %v5014_v60 }
 0x24a   :  { %3515 = vmatpush1.bf16.msra.mxu0 %v4925_v19  ;;  %4441 = vmatpush3.bf16.msra.mxu1 %v5015_v61 }
 0x24b   :  { %3516 = vmatprep.subr.bf16.mxu0 %v4930_v20  ;;  %4457 = vmatprep.subr.bf16.mxu1 %v5139_v62 }
 0x24e   :  { %3517 = vmatpush1.bf16.msra.mxu0 %v4928_v49  ;;  %v4952_v49 = vld [vmem:[#allocation6 + $0x100] ss:$8 sps:$4 sm:$0xff]  }
 0x24f   :  { %3518 = vmatprep.subr.bf16.mxu0 %v4933_v51 }
 0x252   :  { %3519 = vmatpush1.bf16.msra.mxu0 %v4931_v23  ;;  %v4957_v23 = vld [vmem:[#allocation6 + $0x114] ss:$8 sps:$4 sm:$0xff]  }
 0x253   :  { %3520 = vmatprep.subr.bf16.mxu0 %v4936_v25 }
 0x256   :  { %3521 = vmatpush1.bf16.msra.mxu0 %v4934_v30  ;;  %v4955_v30 = vld [vmem:[#allocation6 + $0x110] ss:$8 sps:$4 sm:$0xff]  }
 0x257   :  { %3522 = vmatprep.subr.bf16.mxu0 %v4939_v31  ;;  %v4960_v31 = vld [vmem:[#allocation6 + $0x124] ss:$8 sps:$4 sm:$0xff]  }
 0x25a   :  { %3523 = vmatpush1.bf16.msra.mxu0 %v4937_v32  ;;  %v4958_v32 = vld [vmem:[#allocation6 + $0x120] ss:$8 sps:$4 sm:$0xff]  }
 0x25b   :  { %3524 = vmatprep.subr.bf16.mxu0 %v4942_v4  ;;  %v4963_v4 = vld [vmem:[#allocation6 + $0x134] ss:$8 sps:$4 sm:$0xff]  }
 0x25e   :  { %3525 = vmatpush1.bf16.msra.mxu0 %v4940_v34  ;;  %v4961_v34 = vld [vmem:[#allocation6 + $0x130] ss:$8 sps:$4 sm:$0xff]  }
 0x25f   :  { %3526 = vmatprep.subr.bf16.mxu0 %v4945_v36  ;;  %v4966_v36 = vld [vmem:[#allocation6 + $0x144] ss:$8 sps:$4 sm:$0xff]  }
 0x262   :  { %3527 = vmatpush1.bf16.msra.mxu0 %v4943_v37  ;;  %v4964_v37 = vld [vmem:[#allocation6 + $0x140] ss:$8 sps:$4 sm:$0xff]  }
 0x263   :  { %3528 = vmatprep.subr.bf16.mxu0 %v4948_v38  ;;  %v4969_v38 = vld [vmem:[#allocation6 + $0x154] ss:$8 sps:$4 sm:$0xff]  }
 0x266   :  { %3529 = vmatpush1.bf16.msra.mxu0 %v4946_v39  ;;  %v4967_v39 = vld [vmem:[#allocation6 + $0x150] ss:$8 sps:$4 sm:$0xff]  }
 0x267   :  { %3530 = vmatprep.subr.bf16.mxu0 %v4951_v40  ;;  %v4972_v40 = vld [vmem:[#allocation6 + $0x164] ss:$8 sps:$4 sm:$0xff]  }
 0x26a   :  { %3531 = vmatpush1.bf16.msra.mxu0 %v4949_v41  ;;  %v4970_v41 = vld [vmem:[#allocation6 + $0x160] ss:$8 sps:$4 sm:$0xff]  }
 0x26b   :  { %3543 = vmatprep.subr.bf16.mxu0 %v4954_v42  ;;  %v4975_v42 = vld [vmem:[#allocation6 + $0x174] ss:$8 sps:$4 sm:$0xff]  }
 0x300   :  { %v2869_v0 = vpop.f32.mrb[8].mxu0  ;;  %v3041_v2 = vpop.f32.mrb[8].mxu1 }
 0x301   :  { %v2871_v3 = vpop.f32.mrb[9].mxu0  ;;  %v3043_v5 = vpop.f32.mrb[9].mxu1 }
 0x302   :  { %v2873_v7 = vpop.f32.mrb[10].mxu0  ;;  %v3045_v8 = vpop.f32.mrb[10].mxu1 }
 0x303   :  { %v3050_v43 = vpack.c.bf16 %v2873_v7, %v2869_v0  ;;  %v3052_v26 = vpack.c.bf16 %v3045_v8, %v3041_v2  ;;  %v2875_v27 = vpop.f32.mrb[11].mxu0  ;;  %v3047_v9 = vpop.f32.mrb[11].mxu1  ;;  %v3588_v0 = vld [vmem:[%s5428_s6] sm:$0x3] }
 0x304   :  { %v3051_v10 = vpack.c.bf16 %v2875_v27, %v2871_v3  ;;  %v3053_v11 = vpack.c.bf16 %v3047_v9, %v3043_v5  ;;  %v3593_v2 = vrot.slane %v3588_v0, %v5276_v13  ;;  %v3597_v3 = vrot.slane %v3588_v0, %v5284_v15  ;;  %v5016_v15 = vld [vmem:[%s5431_s9] sm:$0xff]  }
 0x305   :  { %v3108_v16 = vadd.bf16 %v3086_v6, %v3050_v43  ;;  %v5371_v17 = vadd.bf16 %v3100_v33, %v3052_v26 }
 0x306   :  { %v3109_v18 = vadd.bf16 %v3093_v12, %v3051_v10  ;;  %v3111_v19 = vadd.bf16 %v3107_v21, %v3053_v11  ;;  %v3600_v5 = vpack.c.bf16 %v3593_v2, %v3593_v2  ;;  %v3601_v6 = vpack.c.bf16 %v3597_v3, %v3597_v3 }
 0x307   :  { %v3112_v51 = vmax.bf16 %v5138_v35, %v3108_v16  ;;  %v3114_v22 = vmax.bf16 %v5138_v35, %v5371_v17 }
 0x308   :  { %v3113_v20 = vmax.bf16 %v5138_v35, %v3109_v18  ;;  %v3115_v25 = vmax.bf16 %v5138_v35, %v3111_v19  ;;  %v3603_v33 = vpack.i.b16 %v3600_v5, %v3600_v5  ;;  %v3610_v7 = vpack.i.b16 %v3601_v6, %v3601_v6  ;;  %v5017_v19 = vld [vmem:[%s5431_s9 + $0x8] sm:$0xff]  }
 0x30a   :  { %3532 = vmatprep.mubr.bf16.mxu0 %v3113_v20  ;;  %v3608_v21 = vrot.slane %v3603_v33, %v5276_v13  ;;  %v3615_v26 = vrot.slane %v3610_v7, %v5276_v13  ;;  %v5018_v20 = vld [vmem:[%s5431_s9 + $0x10] sm:$0xff]  }
 0x30b   :  { %3533 = vmatmul.mubr.bf16.vlgmr.msra.gmra.mrb[12].mxu0 %v3112_v51  ;;  %v5020_v51 = vld [vmem:[%s5431_s9 + $0x20] sm:$0xff]  }
 0x30c   :  { %3544 = vmatpush1.bf16.msra.mxu0 %v4952_v49  ;;  %3575 = vmatprep.mubr.bf16.mxu0 %v3115_v25  ;;  %v5019_v49 = vld [vmem:[%s5431_s9 + $0x18] sm:$0xff]   ;;  %v5022_v25 = vld [vmem:[%s5431_s9 + $0x30] sm:$0xff]  }
 0x30d   :  { %3545 = vmatprep.subr.bf16.mxu0 %v4957_v23  ;;  %v5021_v23 = vld [vmem:[%s5431_s9 + $0x28] sm:$0xff]  }
 0x310   :  { %3546 = vmatpush1.bf16.msra.mxu0 %v4955_v30  ;;  %v5023_v30 = vld [vmem:[%s5431_s9 + $0x38] sm:$0xff]  }
 0x311   :  { %3547 = vmatprep.subr.bf16.mxu0 %v4960_v31  ;;  %v3790_v31 = vld [vmem:[%s5430_s8] sm:$0x1] }
 0x314   :  { %3548 = vmatpush1.bf16.msra.mxu0 %v4958_v32  ;;  %v3791_v32 = vpack.c.bf16 %v3790_v31, %v3790_v31 }
 0x315   :  { %3549 = vmatprep.subr.bf16.mxu0 %v4963_v4 }
 0x318   :  { %3550 = vmatpush1.bf16.msra.mxu0 %v4961_v34  ;;  %v3793_v34 = vpack.i.b16 %v3791_v32, %v3791_v32 }
 0x319   :  { %3551 = vmatprep.subr.bf16.mxu0 %v4966_v36 }
 0x31c   :  { %3552 = vmatpush1.bf16.msra.mxu0 %v4964_v37 }
 0x31d   :  { %3553 = vmatprep.subr.bf16.mxu0 %v4969_v38 }
 0x320   :  { %3554 = vmatpush1.bf16.msra.mxu0 %v4967_v39 }
 0x321   :  { %3555 = vmatprep.subr.bf16.mxu0 %v4972_v40 }
 0x324   :  { %3556 = vmatpush1.bf16.msra.mxu0 %v4970_v41  ;;  %v3798_v41 = vrot.slane %v3793_v34, %v5276_v13 }
 0x325   :  { %3557 = vmatprep.subr.bf16.mxu0 %v4975_v42 }
 0x328   :  { %3558 = vmatpush1.bf16.msra.mxu0 %v4973_v44 }
 0x329   :  { %3559 = vmatprep.subr.bf16.mxu0 %v4978_v45 }
 0x32c   :  { %3560 = vmatpush1.bf16.msra.mxu0 %v4976_v46  ;;  %v4408_v46 = vld [vmem:[%s5432_s10] ss:$0 sm:$0xff] }
 0x32d   :  { %3561 = vmatprep.subr.bf16.mxu0 %v4981_v47 }
 0x330   :  { %3562 = vmatpush1.bf16.msra.mxu0 %v4979_v48 }
 0x331   :  { %3563 = vmatprep.subr.bf16.mxu0 %v4984_v50 }
 0x334   :  { %3564 = vmatpush1.bf16.msra.mxu0 %v4982_v24 }
 0x335   :  { %3565 = vmatprep.subr.bf16.mxu0 %v4987_v52 }
 0x338   :  { %3566 = vmatpush1.bf16.msra.mxu0 %v4985_v53 }
 0x339   :  { %3567 = vmatprep.subr.bf16.mxu0 %v4990_v54 }
 0x33c   :  { %3568 = vmatpush1.bf16.msra.mxu0 %v4988_v55 }
 0x33d   :  { %3569 = vmatprep.subr.bf16.mxu0 %v4993_v56 }
 0x340   :  { %3570 = vmatpush1.bf16.msra.mxu0 %v4991_v57 }
 0x341   :  { %3571 = vmatprep.subr.bf16.mxu0 %v4996_v58 }
 0x344   :  { %3572 = vmatpush1.bf16.msra.mxu0 %v4994_v63 }
 0x345   :  { %3573 = vmatprep.subr.bf16.mxu0 %v4999_v1 }
 0x348   :  { %3574 = vmatpush1.bf16.msra.mxu0 %v4997_v14 }
 0x34b   :  { %3576 = vmatmul.mubr.bf16.vlgmr.msra.gmra.mrb[12].mxu0 %v3114_v22 }
 0x41e   :  { %v3577_v8 = vpop.f32.mrb[12].mxu0 }
 0x41f   :  { %v3579_v12 = vpop.f32.mrb[13].mxu0 }
 0x420   :  { %v3581_v43 = vpop.f32.mrb[14].mxu0 }
 0x421   :  { %v3586_v27 = vpack.c.bf16 %v3581_v43, %v3577_v8  ;;  %v3583_v9 = vpop.f32.mrb[15].mxu0 }
 0x422   :  { %v3587_v10 = vpack.c.bf16 %v3583_v9, %v3579_v12 }
 0x423   :  { %v3616_v11 = vadd.bf16 %v3608_v21, %v3586_v27 }
 0x424   :  { %v3617_v16 = vadd.bf16 %v3615_v26, %v3587_v10 }
 0x425   :  { %v3618_v18 = vmax.bf16 %v5138_v35, %v3616_v11 }
 0x426   :  { %v3619_v17 = vmax.bf16 %v5138_v35, %v3617_v16 }
 0x428   :  { %3780 = vmatprep.mubr.bf16.mxu1 %v3619_v17 }
 0x429   :  { %3781 = vmatmul.mubr.bf16.vlgmr.msra.gmra.mrb[12].mxu1 %v3618_v18 }
 0x42a   :  { %4458 = vmatpush3.bf16.msra.mxu1 %v5016_v15  ;;  %4473 = vmatprep.mubr.msk.bf16.mxu1 %vm5140_vm0, %v5139_v62 }
 0x42b   :  { %4459 = vmatprep.subr.bf16.mxu1 %v5139_v62 }
 0x42e   :  { %4460 = vmatpush3.bf16.msra.mxu1 %v5017_v19 }
 0x42f   :  { %4461 = vmatprep.subr.bf16.mxu1 %v5139_v62 }
 0x432   :  { %4462 = vmatpush3.bf16.msra.mxu1 %v5018_v20 }
 0x433   :  { %4463 = vmatprep.subr.bf16.mxu1 %v5139_v62 }
 0x436   :  { %4464 = vmatpush3.bf16.msra.mxu1 %v5019_v49 }
 0x437   :  { %4465 = vmatprep.subr.bf16.mxu1 %v5139_v62 }
 0x43a   :  { %4466 = vmatpush3.bf16.msra.mxu1 %v5020_v51 }
 0x43b   :  { %4467 = vmatprep.subr.bf16.mxu1 %v5139_v62 }
 0x43e   :  { %4468 = vmatpush3.bf16.msra.mxu1 %v5021_v23 }
 0x43f   :  { %4469 = vmatprep.subr.bf16.mxu1 %v5139_v62 }
 0x442   :  { %4470 = vmatpush3.bf16.msra.mxu1 %v5022_v25 }
 0x443   :  { %4471 = vmatprep.subr.bf16.mxu1 %v5139_v62 }
 0x446   :  { %4472 = vmatpush3.bf16.msra.mxu1 %v5023_v30 }
 0x4fc   :  { %v4442_v4 = vpop.f32.mrb[12].mxu1 }
 0x4fd   :  { %v4443_v36 = vpop.f32.mrb[13].mxu1 }
 0x4fe   :  { %v4444_v37 = vadd.f32 %v4443_v36, %v4442_v4  ;;  %v4445_v38 = vpop.f32.mrb[14].mxu1 }
 0x4ff   :  { %v4446_v39 = vpop.f32.mrb[15].mxu1 }
 0x500   :  { %v4447_v40 = vadd.f32 %v4446_v39, %v4445_v38 }
 0x502   :  { %v3789_v42 = vpack.c.bf16 %v4447_v40, %v4444_v37 }
 0x504   :  { %v3799_v44 = vadd.bf16 %v3798_v41, %v3789_v42 }
 0x506   :  { %v3800_v45 = vmax.bf16 %v5138_v35, %v3799_v44 }
 0x508   :  { %4474 = vmatmul.mubr.bf16.vlgmr.msra.gmra.mrb[16].mxu1 %v3800_v45 }
 0x5db   :  { %v3906_v47 = vpop.f32.mrb[16].mxu1 }
 0x5dc   :  { %v3907_v48 = vadd.f32 %v4408_v46, %v3906_v47  ;;  %v4475_v50 = vpop.f32.mrb[17].mxu1 }
 0x5dd   :  { %v3909_v24 = vpop.f32.mrb[18].mxu1 }
 0x5de   :  { %v3913_v52 = vsub.f32 0.0, %v3907_v48  ;;  %v3910_v53 = vadd.f32 %v4408_v46, %v3909_v24  ;;  %v4476_v54 = vpop.f32.mrb[19].mxu1 }
 0x5e0   :  { %v3915_v55 = vmul.f32 1.442695, %v3913_v52  ;;  %v3914_v56 = vsub.f32 0.0, %v3910_v53 }
 0x5e2   :  { %5024 = vpow2.f32 %v3915_v55  ;;  %v3917_v13 = vmul.f32 1.442695, %v3914_v56 }
 0x5e4   :  { %5026 = vpow2.f32 %v3917_v13 }
 0x5ec   :  { %v5025_v57 = vpop.eup %5024 }
 0x5ed   :  { %v3919_v58 = vadd.f32 1.0, %v5025_v57 }
 0x5ee   :  { %v5027_v35 = vpop.eup %5026 }
 0x5ef   :  { %5028 = vrcp.f32 %v3919_v58  ;;  %v3920_v63 = vadd.f32 1.0, %v5027_v35 }
 0x5f1   :  { %5030 = vrcp.f32 %v3920_v63 }
 0x5f9   :  { %v5029_v1 = vpop.eup %5028 }
 0x5fa   :  { %v3923_v14 = vmax.f32 %v5029_v1, 0.0 }
 0x5fb   :  { %v5031_v22 = vpop.eup %5030 }
 0x5fc   :  { %v3924_v28 = vmax.f32 %v5031_v22, 0.0  ;;  %v3925_v29 = vmin.f32 %v3923_v14, 1.0 }
 0x5fe   :  { %v3926_v59 = vmin.f32 %v3924_v28, 1.0 }
 0x600   :  { %v4424_v60 = vpack.c.bf16 %v3926_v59, %v3925_v29 }
 0x602   :  { %4425 = vst [vmem:[%s5433_s11] sm:$0xff] %v4424_v60  }
 0x603   :  { %3941 = vsyncpa [#allocation3], 1 }
 0x604   :  { %3942 = vsyncpa [#allocation5], 1 }
 0x605   :  { %3943 = vsyncpa [#allocation8], 1 }

</bundles_post_ra>
